<compile_context>
chip_gen: v6e
topology: v6e:2x2x1
jax: 0.10.0
libtpu: 0.0.40
codegen_flags: <defaults>
</compile_context>

<pallas_src>
import functools

import jax
import jax.numpy as jnp
from jax.experimental import pallas as pl
from jax.experimental.pallas import tpu as pltpu

HIDDEN = 256
IN_PAD = 128    # input_dim (7) padded to one lane tile
OUT_PAD = 128   # output_dim (7) padded to one lane tile
TB_MAX = 1024   # largest batch tile (multiple of 16 for bf16 sublane packing)


def _round_up(n, m):
    return ((n + m - 1) // m) * m


# ---------------------------------------------------------------------------
# Kernel
# ---------------------------------------------------------------------------
def _mlp_kernel(x_ref, w_in_ref, w_mid_ref, w_skip_ref, w_out_ref,
                b_hid_ref, b_out_ref, out_ref):
    x = x_ref[...]            # (TB, IN_PAD)   bf16
    b = b_hid_ref[...]        # (8, 256)       f32

    def dot(a, w):            # bf16 x bf16 -> f32 accumulation on the MXU
        return jnp.dot(a, w, preferred_element_type=jnp.float32)

    def relu_bf16(y_f32):     # bias-add / ReLU stay f32; bf16 only for next MXU op
        return jnp.maximum(y_f32, 0.0).astype(jnp.bfloat16)

    h = relu_bf16(dot(x, w_in_ref[...]) + b[0:1])
    h = relu_bf16(dot(h, w_mid_ref[0]) + b[1:2])
    h = relu_bf16(dot(h, w_mid_ref[1]) + b[2:3])
    h = relu_bf16(dot(h, w_mid_ref[2]) + b[3:4])
    # skip-concat layer, concat-free: [h, x] @ W4 == h @ W4[:256] + x @ W4[256:]
    h = relu_bf16(dot(h, w_mid_ref[3]) + dot(x, w_skip_ref[...]) + b[4:5])
    h = relu_bf16(dot(h, w_mid_ref[4]) + b[5:6])
    h = relu_bf16(dot(h, w_mid_ref[5]) + b[6:7])
    y = jnp.maximum(dot(h, w_out_ref[...]) + b_out_ref[...], 0.0)   # final ReLU
    out_ref[...] = y.astype(out_ref.dtype)


# ---------------------------------------------------------------------------
# Parameters
# ---------------------------------------------------------------------------
def make_params(key, input_dim, output_dim):
    """Deterministic synthetic params in PyTorch nn.Linear layout (out, in), f32."""
    dims = ([(HIDDEN, input_dim)] + [(HIDDEN, HIDDEN)] * 3 +
            [(HIDDEN, HIDDEN + input_dim)] + [(HIDDEN, HIDDEN)] * 2 +
            [(output_dim, HIDDEN)])
    params = []
    for (o, i) in dims:
        key, kw, kb = jax.random.split(key, 3)
        W = jax.random.normal(kw, (o, i), jnp.float32) * 0.05
        b = jax.random.normal(kb, (o,), jnp.float32) * 0.05
        params.append((W, b))
    return params


def prepare_params(params, input_dim, output_dim):
    """One-time repack of PyTorch-layout params into kernel-ready arrays.

    Do this ONCE per model; pass the result to inverse_dynamics_forward for
    every inference call (the repacking is not on the per-call path anymore).
    """
    f32, bf16 = jnp.float32, jnp.bfloat16

    # layer 0 weight, feature-padded: (IN_PAD, 256) bf16
    W0, _ = params[0]
    w_in = jnp.zeros((IN_PAD, HIDDEN), bf16).at[:input_dim, :].set(W0.T.astype(bf16))

    # six 256x256 weights stacked: layers 1,2,3, the h-half of layer 4, layers 5,6
    W4, _ = params[4]
    W4t = W4.T                                       # (256+input_dim, 256)
    mid_list = [params[1][0].T, params[2][0].T, params[3][0].T,
                W4t[:HIDDEN, :], params[5][0].T, params[6][0].T]
    w_mid = jnp.stack([m.astype(bf16) for m in mid_list], axis=0)   # (6,256,256)

    # x-half of the skip layer, feature-padded
    w_skip = jnp.zeros((IN_PAD, HIDDEN), bf16).at[:input_dim, :].set(
        W4t[HIDDEN:, :].astype(bf16))

    # output layer, lane-padded to a multiple of 128
    W7, b7 = params[7]
    w_out = jnp.zeros((HIDDEN, OUT_PAD), bf16).at[:, :output_dim].set(W7.T.astype(bf16))

    # biases: hidden biases packed into one (8,256) f32 array (rows 0..6 used)
    b_hid = jnp.zeros((8, HIDDEN), f32).at[:7, :].set(
        jnp.stack([params[i][1].astype(f32) for i in range(7)], axis=0))
    b_out = jnp.zeros((1, OUT_PAD), f32).at[0, :output_dim].set(b7.astype(f32))

    packed = (w_in, w_mid, w_skip, w_out, b_hid, b_out)
    # Materialize now so repacking cost is paid exactly once.
    return jax.tree_util.tree_map(jax.block_until_ready, packed)


# ---------------------------------------------------------------------------
# Forward
# ---------------------------------------------------------------------------
def _choose_tile(B):
    """Pick (TB, B_pad). TB is a multiple of 16; for B > 16 the grid has >= 2
    roughly balanced steps so the 'parallel' axis shards across both v7x TCs."""
    if B <= 16:
        return 16, 16                      # tiny batch: latency floor, grid=1
    half = _round_up(_round_up(B, 16) // 2, 16)
    TB = max(16, min(TB_MAX, half))
    return TB, _round_up(B, TB)


@functools.partial(jax.jit, static_argnames=("input_dim", "output_dim"))
def _forward_jit(x, packed, *, input_dim, output_dim):
    w_in, w_mid, w_skip, w_out, b_hid, b_out = packed
    B = x.shape[0]
    TB, B_pad = _choose_tile(B)
    bf16, f32 = jnp.bfloat16, jnp.float32

    # pad batch + features with zeros, cast to bf16 (zero-pad is exact)
    xp = jnp.zeros((B_pad, IN_PAD), bf16).at[:B, :input_dim].set(x.astype(bf16))

    weight_args = [w_in, w_mid, w_skip, w_out, b_hid, b_out]

    def full_spec(a):
        nd = a.ndim
        return pl.BlockSpec(a.shape, lambda i, nd=nd: (0,) * nd)

    out_padded = pl.pallas_call(
        _mlp_kernel,
        out_shape=jax.ShapeDtypeStruct((B_pad, OUT_PAD), f32),
        grid_spec=pltpu.PrefetchScalarGridSpec(
            num_scalar_prefetch=0,
            grid=(B_pad // TB,),
            in_specs=[pl.BlockSpec((TB, IN_PAD), lambda i: (i, 0))]
                     + [full_spec(a) for a in weight_args],
            out_specs=pl.BlockSpec((TB, OUT_PAD), lambda i: (i, 0)),
        ),
        compiler_params=pltpu.CompilerParams(
            dimension_semantics=("parallel",)),
    )(xp, *weight_args)

    return out_padded[:B, :output_dim]


def inverse_dynamics_forward(x, packed, input_dim, output_dim):
    return _forward_jit(x, packed, input_dim=input_dim, output_dim=output_dim)


# ---------------------------------------------------------------------------
# Reference (matched bf16-operand / f32-accumulate numerics)
# ---------------------------------------------------------------------------
def ref_forward(x, params):
    bf16, f32 = jnp.bfloat16, jnp.float32

    def dense_relu(h, W, b):
        y = jnp.dot(h.astype(bf16), W.T.astype(bf16),
                    preferred_element_type=f32) + b.astype(f32)
        return jnp.maximum(y, 0.0)

    h = x
    for (W, b) in params[:4]:
        h = dense_relu(h, W, b)
    h = jnp.concatenate([h, x], axis=-1)
    for (W, b) in params[4:]:
        h = dense_relu(h, W, b)
    return h


if __name__ == "__main__":
    key = jax.random.PRNGKey(0)
    key, kx, kx2, kp = jax.random.split(key, 4)

    input_dim = 7    # achieved delta pose (xyz + rpy + gripper)
    output_dim = 7

    params = make_params(kp, input_dim, output_dim)
    packed = prepare_params(params, input_dim, output_dim)   # one-time repack

    # small batch (grid=1, latency floor)
    x = jax.random.normal(kx, (8, input_dim), jnp.float32)
    out = jax.block_until_ready(
        inverse_dynamics_forward(x, packed, input_dim, output_dim))
    ref = ref_forward(x, params)
    assert out.shape == (8, output_dim)
    assert jnp.allclose(out, ref, atol=2e-3, rtol=2e-3), "mismatch vs reference (B=8)"

    # medium batch (grid=2 balanced steps -> both TCs on v7x)
    x2 = jax.random.normal(kx2, (40, input_dim), jnp.float32)
    out2 = jax.block_until_ready(
        inverse_dynamics_forward(x2, packed, input_dim, output_dim))
    ref2 = ref_forward(x2, params)
    assert out2.shape == (40, output_dim)
    assert jnp.allclose(out2, ref2, atol=2e-3, rtol=2e-3), "mismatch vs reference (B=40)"

    print("KERNEL_OK")
</pallas_src>

<mosaic_0001>
module attributes {stable_mosaic.version = 11 : i64} {
  func.func @_mlp_kernel(%arg0: i32, %arg1: memref<16x128xbf16, #tpu.memory_space<vmem>>, %arg2: memref<128x256xbf16, #tpu.memory_space<vmem>>, %arg3: memref<6x256x256xbf16, #tpu.memory_space<vmem>>, %arg4: memref<128x256xbf16, #tpu.memory_space<vmem>>, %arg5: memref<256x128xbf16, #tpu.memory_space<vmem>>, %arg6: memref<8x256xf32, #tpu.memory_space<vmem>>, %arg7: memref<1x128xf32, #tpu.memory_space<vmem>>, %arg8: memref<16x128xf32, #tpu.memory_space<vmem>>) attributes {dimension_semantics = [#tpu.dimension_semantics<parallel>], iteration_bounds = array<i64: 1>, scalar_prefetch = 0 : i64, scratch_operands = 0 : i64, tpu.core_type = #tpu.core_type<tc>, window_params = [{transform_indices = @transform_0, window_bounds = array<i64: 16, 128>}, {pipeline_mode = #tpu.pipeline_mode<synchronous>, transform_indices = @transform_1, window_bounds = array<i64: 128, 256>}, {pipeline_mode = #tpu.pipeline_mode<synchronous>, transform_indices = @transform_2, window_bounds = array<i64: 6, 256, 256>}, {pipeline_mode = #tpu.pipeline_mode<synchronous>, transform_indices = @transform_3, window_bounds = array<i64: 128, 256>}, {pipeline_mode = #tpu.pipeline_mode<synchronous>, transform_indices = @transform_4, window_bounds = array<i64: 256, 128>}, {pipeline_mode = #tpu.pipeline_mode<synchronous>, transform_indices = @transform_5, window_bounds = array<i64: 8, 256>}, {pipeline_mode = #tpu.pipeline_mode<synchronous>, transform_indices = @transform_6, window_bounds = array<i64: 1, 128>}, {transform_indices = @transform_7, window_bounds = array<i64: 16, 128>}]} {
    %c0 = arith.constant 0 : index
    %c0_0 = arith.constant 0 : index
    %0 = vector.load %arg1[%c0, %c0_0] : memref<16x128xbf16, #tpu.memory_space<vmem>>, vector<16x128xbf16>
    %c0_1 = arith.constant 0 : index
    %c0_2 = arith.constant 0 : index
    %1 = vector.load %arg6[%c0_1, %c0_2] : memref<8x256xf32, #tpu.memory_space<vmem>>, vector<8x256xf32>
    %c0_3 = arith.constant 0 : index
    %c0_4 = arith.constant 0 : index
    %2 = vector.load %arg2[%c0_3, %c0_4] : memref<128x256xbf16, #tpu.memory_space<vmem>>, vector<128x256xbf16>
    %cst = arith.constant dense<0.000000e+00> : vector<16x256xf32>
    %3 = tpu.matmul %0, %2, %cst {dimension_numbers = #tpu.dot_dimension_numbers<[1], [0], [0], [1], [0, 0, 1, 1], [], []>} : vector<16x128xbf16>, vector<128x256xbf16>, vector<16x256xf32> -> vector<16x256xf32>
    %4 = vector.extract_strided_slice %1 {offsets = [0, 0], sizes = [1, 256], strides = [1, 1]} : vector<8x256xf32> to vector<1x256xf32>
    %5 = vector.broadcast %4 : vector<1x256xf32> to vector<16x256xf32>
    %6 = arith.addf %3, %5 : vector<16x256xf32>
    %cst_5 = arith.constant 0.000000e+00 : f32
    %7 = vector.broadcast %cst_5 : f32 to vector<16x256xf32>
    %8 = arith.maximumf %6, %7 : vector<16x256xf32>
    %9 = arith.truncf %8 : vector<16x256xf32> to vector<16x256xbf16>
    %c0_6 = arith.constant 0 : index
    %c0_7 = arith.constant 0 : index
    %c0_8 = arith.constant 0 : index
    %10 = vector.load %arg3[%c0_6, %c0_7, %c0_8] : memref<6x256x256xbf16, #tpu.memory_space<vmem>>, vector<1x256x256xbf16>
    %11 = vector.shape_cast %10 : vector<1x256x256xbf16> to vector<256x256xbf16>
    %cst_9 = arith.constant dense<0.000000e+00> : vector<16x256xf32>
    %12 = tpu.matmul %9, %11, %cst_9 {dimension_numbers = #tpu.dot_dimension_numbers<[1], [0], [0], [1], [0, 0, 1, 1], [], []>} : vector<16x256xbf16>, vector<256x256xbf16>, vector<16x256xf32> -> vector<16x256xf32>
    %13 = vector.extract_strided_slice %1 {offsets = [1, 0], sizes = [1, 256], strides = [1, 1]} : vector<8x256xf32> to vector<1x256xf32>
    %14 = vector.broadcast %13 : vector<1x256xf32> to vector<16x256xf32>
    %15 = arith.addf %12, %14 : vector<16x256xf32>
    %cst_10 = arith.constant 0.000000e+00 : f32
    %16 = vector.broadcast %cst_10 : f32 to vector<16x256xf32>
    %17 = arith.maximumf %15, %16 : vector<16x256xf32>
    %18 = arith.truncf %17 : vector<16x256xf32> to vector<16x256xbf16>
    %c1 = arith.constant 1 : index
    %c0_11 = arith.constant 0 : index
    %c0_12 = arith.constant 0 : index
    %19 = vector.load %arg3[%c1, %c0_11, %c0_12] : memref<6x256x256xbf16, #tpu.memory_space<vmem>>, vector<1x256x256xbf16>
    %20 = vector.shape_cast %19 : vector<1x256x256xbf16> to vector<256x256xbf16>
    %cst_13 = arith.constant dense<0.000000e+00> : vector<16x256xf32>
    %21 = tpu.matmul %18, %20, %cst_13 {dimension_numbers = #tpu.dot_dimension_numbers<[1], [0], [0], [1], [0, 0, 1, 1], [], []>} : vector<16x256xbf16>, vector<256x256xbf16>, vector<16x256xf32> -> vector<16x256xf32>
    %22 = vector.extract_strided_slice %1 {offsets = [2, 0], sizes = [1, 256], strides = [1, 1]} : vector<8x256xf32> to vector<1x256xf32>
    %23 = vector.broadcast %22 : vector<1x256xf32> to vector<16x256xf32>
    %24 = arith.addf %21, %23 : vector<16x256xf32>
    %cst_14 = arith.constant 0.000000e+00 : f32
    %25 = vector.broadcast %cst_14 : f32 to vector<16x256xf32>
    %26 = arith.maximumf %24, %25 : vector<16x256xf32>
    %27 = arith.truncf %26 : vector<16x256xf32> to vector<16x256xbf16>
    %c2 = arith.constant 2 : index
    %c0_15 = arith.constant 0 : index
    %c0_16 = arith.constant 0 : index
    %28 = vector.load %arg3[%c2, %c0_15, %c0_16] : memref<6x256x256xbf16, #tpu.memory_space<vmem>>, vector<1x256x256xbf16>
    %29 = vector.shape_cast %28 : vector<1x256x256xbf16> to vector<256x256xbf16>
    %cst_17 = arith.constant dense<0.000000e+00> : vector<16x256xf32>
    %30 = tpu.matmul %27, %29, %cst_17 {dimension_numbers = #tpu.dot_dimension_numbers<[1], [0], [0], [1], [0, 0, 1, 1], [], []>} : vector<16x256xbf16>, vector<256x256xbf16>, vector<16x256xf32> -> vector<16x256xf32>
    %31 = vector.extract_strided_slice %1 {offsets = [3, 0], sizes = [1, 256], strides = [1, 1]} : vector<8x256xf32> to vector<1x256xf32>
    %32 = vector.broadcast %31 : vector<1x256xf32> to vector<16x256xf32>
    %33 = arith.addf %30, %32 : vector<16x256xf32>
    %cst_18 = arith.constant 0.000000e+00 : f32
    %34 = vector.broadcast %cst_18 : f32 to vector<16x256xf32>
    %35 = arith.maximumf %33, %34 : vector<16x256xf32>
    %36 = arith.truncf %35 : vector<16x256xf32> to vector<16x256xbf16>
    %c3 = arith.constant 3 : index
    %c0_19 = arith.constant 0 : index
    %c0_20 = arith.constant 0 : index
    %37 = vector.load %arg3[%c3, %c0_19, %c0_20] : memref<6x256x256xbf16, #tpu.memory_space<vmem>>, vector<1x256x256xbf16>
    %38 = vector.shape_cast %37 : vector<1x256x256xbf16> to vector<256x256xbf16>
    %cst_21 = arith.constant dense<0.000000e+00> : vector<16x256xf32>
    %39 = tpu.matmul %36, %38, %cst_21 {dimension_numbers = #tpu.dot_dimension_numbers<[1], [0], [0], [1], [0, 0, 1, 1], [], []>} : vector<16x256xbf16>, vector<256x256xbf16>, vector<16x256xf32> -> vector<16x256xf32>
    %c0_22 = arith.constant 0 : index
    %c0_23 = arith.constant 0 : index
    %40 = vector.load %arg4[%c0_22, %c0_23] : memref<128x256xbf16, #tpu.memory_space<vmem>>, vector<128x256xbf16>
    %cst_24 = arith.constant dense<0.000000e+00> : vector<16x256xf32>
    %41 = tpu.matmul %0, %40, %cst_24 {dimension_numbers = #tpu.dot_dimension_numbers<[1], [0], [0], [1], [0, 0, 1, 1], [], []>} : vector<16x128xbf16>, vector<128x256xbf16>, vector<16x256xf32> -> vector<16x256xf32>
    %42 = arith.addf %39, %41 : vector<16x256xf32>
    %43 = vector.extract_strided_slice %1 {offsets = [4, 0], sizes = [1, 256], strides = [1, 1]} : vector<8x256xf32> to vector<1x256xf32>
    %44 = vector.broadcast %43 : vector<1x256xf32> to vector<16x256xf32>
    %45 = arith.addf %42, %44 : vector<16x256xf32>
    %cst_25 = arith.constant 0.000000e+00 : f32
    %46 = vector.broadcast %cst_25 : f32 to vector<16x256xf32>
    %47 = arith.maximumf %45, %46 : vector<16x256xf32>
    %48 = arith.truncf %47 : vector<16x256xf32> to vector<16x256xbf16>
    %c4 = arith.constant 4 : index
    %c0_26 = arith.constant 0 : index
    %c0_27 = arith.constant 0 : index
    %49 = vector.load %arg3[%c4, %c0_26, %c0_27] : memref<6x256x256xbf16, #tpu.memory_space<vmem>>, vector<1x256x256xbf16>
    %50 = vector.shape_cast %49 : vector<1x256x256xbf16> to vector<256x256xbf16>
    %cst_28 = arith.constant dense<0.000000e+00> : vector<16x256xf32>
    %51 = tpu.matmul %48, %50, %cst_28 {dimension_numbers = #tpu.dot_dimension_numbers<[1], [0], [0], [1], [0, 0, 1, 1], [], []>} : vector<16x256xbf16>, vector<256x256xbf16>, vector<16x256xf32> -> vector<16x256xf32>
    %52 = vector.extract_strided_slice %1 {offsets = [5, 0], sizes = [1, 256], strides = [1, 1]} : vector<8x256xf32> to vector<1x256xf32>
    %53 = vector.broadcast %52 : vector<1x256xf32> to vector<16x256xf32>
    %54 = arith.addf %51, %53 : vector<16x256xf32>
    %cst_29 = arith.constant 0.000000e+00 : f32
    %55 = vector.broadcast %cst_29 : f32 to vector<16x256xf32>
    %56 = arith.maximumf %54, %55 : vector<16x256xf32>
    %57 = arith.truncf %56 : vector<16x256xf32> to vector<16x256xbf16>
    %c5 = arith.constant 5 : index
    %c0_30 = arith.constant 0 : index
    %c0_31 = arith.constant 0 : index
    %58 = vector.load %arg3[%c5, %c0_30, %c0_31] : memref<6x256x256xbf16, #tpu.memory_space<vmem>>, vector<1x256x256xbf16>
    %59 = vector.shape_cast %58 : vector<1x256x256xbf16> to vector<256x256xbf16>
    %cst_32 = arith.constant dense<0.000000e+00> : vector<16x256xf32>
    %60 = tpu.matmul %57, %59, %cst_32 {dimension_numbers = #tpu.dot_dimension_numbers<[1], [0], [0], [1], [0, 0, 1, 1], [], []>} : vector<16x256xbf16>, vector<256x256xbf16>, vector<16x256xf32> -> vector<16x256xf32>
    %61 = vector.extract_strided_slice %1 {offsets = [6, 0], sizes = [1, 256], strides = [1, 1]} : vector<8x256xf32> to vector<1x256xf32>
    %62 = vector.broadcast %61 : vector<1x256xf32> to vector<16x256xf32>
    %63 = arith.addf %60, %62 : vector<16x256xf32>
    %cst_33 = arith.constant 0.000000e+00 : f32
    %64 = vector.broadcast %cst_33 : f32 to vector<16x256xf32>
    %65 = arith.maximumf %63, %64 : vector<16x256xf32>
    %66 = arith.truncf %65 : vector<16x256xf32> to vector<16x256xbf16>
    %c0_34 = arith.constant 0 : index
    %c0_35 = arith.constant 0 : index
    %67 = vector.load %arg5[%c0_34, %c0_35] : memref<256x128xbf16, #tpu.memory_space<vmem>>, vector<256x128xbf16>
    %cst_36 = arith.constant dense<0.000000e+00> : vector<16x128xf32>
    %68 = tpu.matmul %66, %67, %cst_36 {dimension_numbers = #tpu.dot_dimension_numbers<[1], [0], [0], [1], [0, 0, 1, 1], [], []>} : vector<16x256xbf16>, vector<256x128xbf16>, vector<16x128xf32> -> vector<16x128xf32>
    %c0_37 = arith.constant 0 : index
    %c0_38 = arith.constant 0 : index
    %69 = vector.load %arg7[%c0_37, %c0_38] : memref<1x128xf32, #tpu.memory_space<vmem>>, vector<1x128xf32>
    %70 = vector.broadcast %69 : vector<1x128xf32> to vector<16x128xf32>
    %71 = arith.addf %68, %70 : vector<16x128xf32>
    %cst_39 = arith.constant 0.000000e+00 : f32
    %72 = vector.broadcast %cst_39 : f32 to vector<16x128xf32>
    %73 = arith.maximumf %71, %72 : vector<16x128xf32>
    %c0_40 = arith.constant 0 : index
    %c0_41 = arith.constant 0 : index
    %74 = vector.load %arg8[%c0_40, %c0_41] : memref<16x128xf32, #tpu.memory_space<vmem>>, vector<16x128xf32>
    tpu.vector_store %arg8[%c0_40, %c0_41], %73 {strides = array<i32>} : memref<16x128xf32, #tpu.memory_space<vmem>>, vector<16x128xf32>,
    return
  }
  func.func @transform_0(%arg0: i32) -> (i32, i32) {
    %c0_i32 = arith.constant 0 : i32
    %c0_i32_0 = arith.constant 0 : i32
    return %arg0, %c0_i32 : i32, i32
  }
  func.func @transform_1(%arg0: i32) -> (i32, i32) {
    %c0_i32 = arith.constant 0 : i32
    %c0_i32_0 = arith.constant 0 : i32
    %c0_i32_1 = arith.constant 0 : i32
    return %c0_i32, %c0_i32_0 : i32, i32
  }
  func.func @transform_2(%arg0: i32) -> (i32, i32, i32) {
    %c0_i32 = arith.constant 0 : i32
    %c0_i32_0 = arith.constant 0 : i32
    %c0_i32_1 = arith.constant 0 : i32
    %c0_i32_2 = arith.constant 0 : i32
    return %c0_i32, %c0_i32_0, %c0_i32_1 : i32, i32, i32
  }
  func.func @transform_3(%arg0: i32) -> (i32, i32) {
    %c0_i32 = arith.constant 0 : i32
    %c0_i32_0 = arith.constant 0 : i32
    %c0_i32_1 = arith.constant 0 : i32
    return %c0_i32, %c0_i32_0 : i32, i32
  }
  func.func @transform_4(%arg0: i32) -> (i32, i32) {
    %c0_i32 = arith.constant 0 : i32
    %c0_i32_0 = arith.constant 0 : i32
    %c0_i32_1 = arith.constant 0 : i32
    return %c0_i32, %c0_i32_0 : i32, i32
  }
  func.func @transform_5(%arg0: i32) -> (i32, i32) {
    %c0_i32 = arith.constant 0 : i32
    %c0_i32_0 = arith.constant 0 : i32
    %c0_i32_1 = arith.constant 0 : i32
    return %c0_i32, %c0_i32_0 : i32, i32
  }
  func.func @transform_6(%arg0: i32) -> (i32, i32) {
    %c0_i32 = arith.constant 0 : i32
    %c0_i32_0 = arith.constant 0 : i32
    %c0_i32_1 = arith.constant 0 : i32
    return %c0_i32, %c0_i32_0 : i32, i32
  }
  func.func @transform_7(%arg0: i32) -> (i32, i32) {
    %c0_i32 = arith.constant 0 : i32
    %c0_i32_0 = arith.constant 0 : i32
    return %arg0, %c0_i32 : i32, i32
  }
}

</mosaic_0001>

<bundles_post_ra>
// kernel: _forward_jit.1
= control target key start
LH: loop header
LB: loop body
LE: loop exit
PB: predicated region body
PF: predicated region fallthrough
CT: control target
= control target key end

     0   :  { %12 = vsyncpa [#allocation3], 0  ;;  %s2898_s0 = inlined_call_operand.vmem [shape: bf16[16,128], index: 0, kind: input, shape index: {}]   ;;  %s2899_s1 = inlined_call_operand.hbm [shape: bf16[128,256], index: 1, kind: input, shape index: {}]   ;;  %s2900_s2 = inlined_call_operand.hbm [shape: bf16[6,256,256], index: 2, kind: input, shape index: {}]   ;;  %s2901_s3 = inlined_call_operand.hbm [shape: bf16[128,256], index: 3, kind: input, shape index: {}]   ;;  %s2902_s4 = inlined_call_operand.hbm [shape: bf16[256,128], index: 4, kind: input, shape index: {}]   ;;  %s2903_s5 = inlined_call_operand.vmem [shape: f32[8,256], index: 5, kind: input, shape index: {}]   ;;  %s2904_s6 = inlined_call_operand.vmem [shape: f32[1,128], index: 6, kind: input, shape index: {}]   ;;  %s2905_s7 = inlined_call_operand.vmem [shape: f32[16,128], index: 7, kind: output, shape index: {}]  }
   0x1   :  { %13 = vsyncpa [#allocation5], 0 }
   0x2   :  { %14 = vsyncpa [#allocation8], 0  ;;  %s2786_s24 = smov [#allocation4]   ;;  %s2787_s26 = smov [#allocation2]  }
   0x3   :  { %s34_s25 = sshll.u32 %s2786_s24, 4  ;;  %s22_s27 = sshll.u32 %s2787_s26, 4  ;;  %s35_s25 = int_to_ptr.vmem [resolvable:$true] %s34_s25  ;;  %s23_s27 = int_to_ptr.vmem [resolvable:$true] %s22_s27 }
   0x4   :  { %s2708_s28 = scalar_lea.vmem %s35_s25, 24576  ;;  %p2713_p1 = scmp.lt.s32.totalorder %s35_s25, %s35_s25 }
   0x5   :  { %p2709_p0 = scmp.ne.s32.totalorder %s35_s25, %s2708_s28  ;;  %p2714_p2 = scmp.lt.s32.totalorder %s2708_s28, %s2708_s28 }
   0x7   :  { %p2715_p3 = por %p2714_p2, %p2713_p1 }
   0x9   :  { %p2716_p4 = pnand %p2715_p3, %p2709_p0 }
   0xb   :  { %2719 = shalt.err (!%p2716_p4)
}
   0xc   :  { %s2788_s29 = smov 128   ;;  %s2789_s30 = smov 8  }
   0xd   :  { %40 = dma.hbm_to_vmem [thread:$0]  %s2900_s2, 24576, %s35_s25, [#allocation5], %s2788_s29, %s2788_s29, %s2789_s30  }
   0xe   :  { %s2728_s10 = scalar_lea.vmem %s23_s27, 2048  ;;  %p2733_p6 = scmp.lt.s32.totalorder %s23_s27, %s23_s27 }
   0xf   :  { %p2729_p5 = scmp.ne.s32.totalorder %s23_s27, %s2728_s10  ;;  %p2734_p7 = scmp.lt.s32.totalorder %s2728_s10, %s2728_s10 }
  0x11   :  { %p2735_p8 = por %p2734_p7, %p2733_p6 }
  0x13   :  { %p2736_p9 = pnand %p2735_p8, %p2729_p5 }
  0x15   :  { %2739 = shalt.err (!%p2736_p9)
}
  0x16   :  { %28 = dma.hbm_to_vmem [thread:$0]  %s2899_s1, 2048, %s23_s27, [#allocation3], %s2788_s29, %s2788_s29, %s2789_s30  }
  0x17   :  { %s2790_s13 = smov [#allocation6]   ;;  %s2791_s15 = smov [#allocation7]  }
  0x18   :  { %s46_s14 = sshll.u32 %s2790_s13, 4  ;;  %s58_s16 = sshll.u32 %s2791_s15, 4  ;;  %s47_s14 = int_to_ptr.vmem [resolvable:$true] %s46_s14  ;;  %s59_s16 = int_to_ptr.vmem [resolvable:$true] %s58_s16 }
  0x19   :  { %s2748_s17 = scalar_lea.vmem %s47_s14, 2048  ;;  %p2753_p11 = scmp.lt.s32.totalorder %s47_s14, %s47_s14 }
  0x1a   :  { %p2749_p10 = scmp.ne.s32.totalorder %s47_s14, %s2748_s17  ;;  %p2754_p12 = scmp.lt.s32.totalorder %s2748_s17, %s2748_s17 }
  0x1c   :  { %p2755_p13 = por %p2754_p12, %p2753_p11 }
  0x1e   :  { %p2756_p0 = pnand %p2755_p13, %p2749_p10 }
  0x20   :  { %2759 = shalt.err (!%p2756_p0)
}
  0x21   :  { %52 = dma.hbm_to_vmem [thread:$0]  %s2901_s3, 2048, %s47_s14, [#allocation5], %s2788_s29, %s2788_s29, %s2789_s30  }
  0x22   :  { %s2768_s19 = scalar_lea.vmem %s59_s16, 2048  ;;  %p2773_p2 = scmp.lt.s32.totalorder %s59_s16, %s59_s16 }
  0x23   :  { %p2769_p1 = scmp.ne.s32.totalorder %s59_s16, %s2768_s19  ;;  %p2774_p3 = scmp.lt.s32.totalorder %s2768_s19, %s2768_s19 }
  0x25   :  { %p2775_p4 = por %p2774_p3, %p2773_p2 }
  0x27   :  { %p2776_p5 = pnand %p2775_p4, %p2769_p1 }
  0x29   :  { %2779 = shalt.err (!%p2776_p5)
}
  0x2a   :  { %s2792_s1 = smov 64   ;;  %s2793_s20 = smov 4  }
  0x2b   :  { %64 = dma.hbm_to_vmem [thread:$0]  %s2902_s4, 2048, %s59_s16, [#allocation8], %s2792_s1, %s2792_s1, %s2793_s20  }
  0x2c   :  { %2780 = dma.done.wait [#allocation3], 2048  }
  0x2d   :  { %2781 = vsyncadd [#allocation3], 4294965248 }
  0x2e   :  { %2782 = dma.done.wait [#allocation5], 26624  }
  0x2f   :  { %2783 = vsyncadd [#allocation5], 4294940672 }
  0x30   :  { %2784 = dma.done.wait [#allocation8], 2048  }
  0x31   :  { %2785 = vsyncadd [#allocation8], 4294965248  ;;  %v2794_v0 = vmov 0   ;;  %v2347_v1 = vld [vmem:[#allocation2 + $0x74] ss:$8 sps:$4 sm:$0xff]   ;;  %v2851_v27 = vld [vmem:[%s2898_s0] sm:$0xff]  }
  0x32   :  { %228 = vmatprep.mubr.bf16.mxu0 %v2794_v0  ;;  %v2349_v2 = vld [vmem:[#allocation2 + $0x70] ss:$8 sps:$4 sm:$0xff]   ;;  %196 = vmatprep.subr.bf16.mxu0 %v2347_v1  ;;  %v2350_v3 = vld [vmem:[#allocation2 + $0x64] ss:$8 sps:$4 sm:$0xff]   ;;  %v2352_v4 = vld [vmem:[#allocation2 + $0x60] ss:$8 sps:$4 sm:$0xff]  }
  0x33   :  { %197 = vmatpush1.bf16.msra.mxu0 %v2349_v2  ;;  %v2353_v5 = vld [vmem:[#allocation2 + $0x54] ss:$8 sps:$4 sm:$0xff]   ;;  %v2355_v6 = vld [vmem:[#allocation2 + $0x50] ss:$8 sps:$4 sm:$0xff]   ;;  %v2356_v7 = vld [vmem:[#allocation2 + $0x44] ss:$8 sps:$4 sm:$0xff]  }
  0x34   :  { %198 = vmatprep.subr.bf16.mxu0 %v2350_v3  ;;  %v2358_v8 = vld [vmem:[#allocation2 + $0x40] ss:$8 sps:$4 sm:$0xff]   ;;  %v2359_v9 = vld [vmem:[#allocation2 + $0x34] ss:$8 sps:$4 sm:$0xff]   ;;  %v2374_v11 = vld [vmem:[#allocation4 + $0x70] ss:$8 sps:$4 sm:$0xff]  }
  0x35   :  { %v2372_v10 = vld [vmem:[#allocation4 + $0x74] ss:$8 sps:$4 sm:$0xff]   ;;  %v2375_v12 = vld [vmem:[#allocation4 + $0x64] ss:$8 sps:$4 sm:$0xff]   ;;  %v2361_v13 = vld [vmem:[#allocation2 + $0x30] ss:$8 sps:$4 sm:$0xff]  }
  0x36   :  { %445 = vmatprep.subr.bf16.mxu1 %v2372_v10  ;;  %v2377_v14 = vld [vmem:[#allocation4 + $0x60] ss:$8 sps:$4 sm:$0xff]   ;;  %v2362_v15 = vld [vmem:[#allocation2 + $0x24] ss:$8 sps:$4 sm:$0xff]   ;;  %v2378_v16 = vld [vmem:[#allocation4 + $0x54] ss:$8 sps:$4 sm:$0xff]  }
  0x37   :  { %199 = vmatpush1.bf16.msra.mxu0 %v2352_v4  ;;  %446 = vmatpush1.bf16.msra.mxu1 %v2374_v11  ;;  %v2364_v17 = vld [vmem:[#allocation2 + $0x20] ss:$8 sps:$4 sm:$0xff]   ;;  %v2380_v18 = vld [vmem:[#allocation4 + $0x50] ss:$8 sps:$4 sm:$0xff]   ;;  %v2365_v19 = vld [vmem:[#allocation2 + $0x14] ss:$8 sps:$4 sm:$0xff]  }
  0x38   :  { %200 = vmatprep.subr.bf16.mxu0 %v2353_v5  ;;  %447 = vmatprep.subr.bf16.mxu1 %v2375_v12  ;;  %v2381_v20 = vld [vmem:[#allocation4 + $0x44] ss:$8 sps:$4 sm:$0xff]   ;;  %v2367_v21 = vld [vmem:[#allocation2 + $0x10] ss:$8 sps:$4 sm:$0xff]   ;;  %v2383_v22 = vld [vmem:[#allocation4 + $0x40] ss:$8 sps:$4 sm:$0xff]  }
  0x39   :  { %v2368_v23 = vld [vmem:[#allocation2 + $0x4] ss:$8 sps:$4 sm:$0xff]   ;;  %v2384_v24 = vld [vmem:[#allocation4 + $0x34] ss:$8 sps:$4 sm:$0xff]   ;;  %v2370_v25 = vld [vmem:[#allocation2] ss:$8 sps:$4 sm:$0xff]  }
  0x3a   :  { %v2386_v26 = vld [vmem:[#allocation4 + $0x30] ss:$8 sps:$4 sm:$0xff]   ;;  %v2387_v28 = vld [vmem:[#allocation4 + $0x24] ss:$8 sps:$4 sm:$0xff]   ;;  %v2389_v29 = vld [vmem:[#allocation4 + $0x20] ss:$8 sps:$4 sm:$0xff]  }
  0x3b   :  { %201 = vmatpush1.bf16.msra.mxu0 %v2355_v6  ;;  %448 = vmatpush1.bf16.msra.mxu1 %v2377_v14  ;;  %v2390_v30 = vld [vmem:[#allocation4 + $0x14] ss:$8 sps:$4 sm:$0xff]   ;;  %v2392_v31 = vld [vmem:[#allocation4 + $0x10] ss:$8 sps:$4 sm:$0xff]   ;;  %v2393_v32 = vld [vmem:[#allocation4 + $0x4] ss:$8 sps:$4 sm:$0xff]  }
  0x3c   :  { %202 = vmatprep.subr.bf16.mxu0 %v2356_v7  ;;  %449 = vmatprep.subr.bf16.mxu1 %v2378_v16  ;;  %v2395_v33 = vld [vmem:[#allocation4] ss:$8 sps:$4 sm:$0xff]   ;;  %v2396_v34 = vld [vmem:[#allocation4 + $0xf4] ss:$8 sps:$4 sm:$0xff]   ;;  %v2398_v35 = vld [vmem:[#allocation4 + $0xf0] ss:$8 sps:$4 sm:$0xff]  }
  0x3d   :  { %v2399_v36 = vld [vmem:[#allocation4 + $0xe4] ss:$8 sps:$4 sm:$0xff]   ;;  %v2401_v37 = vld [vmem:[#allocation4 + $0xe0] ss:$8 sps:$4 sm:$0xff]   ;;  %v2402_v38 = vld [vmem:[#allocation4 + $0xd4] ss:$8 sps:$4 sm:$0xff]  }
  0x3e   :  { %v2404_v39 = vld [vmem:[#allocation4 + $0xd0] ss:$8 sps:$4 sm:$0xff]   ;;  %v2405_v40 = vld [vmem:[#allocation4 + $0xc4] ss:$8 sps:$4 sm:$0xff]   ;;  %v2407_v41 = vld [vmem:[#allocation4 + $0xc0] ss:$8 sps:$4 sm:$0xff]  }
  0x3f   :  { %203 = vmatpush1.bf16.msra.mxu0 %v2358_v8  ;;  %450 = vmatpush1.bf16.msra.mxu1 %v2380_v18  ;;  %v2408_v42 = vld [vmem:[#allocation4 + $0xb4] ss:$8 sps:$4 sm:$0xff]   ;;  %v2410_v43 = vld [vmem:[#allocation4 + $0xb0] ss:$8 sps:$4 sm:$0xff]   ;;  %v2411_v44 = vld [vmem:[#allocation4 + $0xa4] ss:$8 sps:$4 sm:$0xff]  }
  0x40   :  { %204 = vmatprep.subr.bf16.mxu0 %v2359_v9  ;;  %451 = vmatprep.subr.bf16.mxu1 %v2381_v20  ;;  %v2413_v45 = vld [vmem:[#allocation4 + $0xa0] ss:$8 sps:$4 sm:$0xff]   ;;  %v2414_v46 = vld [vmem:[#allocation4 + $0x94] ss:$8 sps:$4 sm:$0xff]   ;;  %v2416_v47 = vld [vmem:[#allocation4 + $0x90] ss:$8 sps:$4 sm:$0xff]  }
  0x41   :  { %v2417_v48 = vld [vmem:[#allocation4 + $0x84] ss:$8 sps:$4 sm:$0xff]   ;;  %v2419_v49 = vld [vmem:[#allocation4 + $0x80] ss:$8 sps:$4 sm:$0xff]   ;;  %v2420_v50 = vld [vmem:[#allocation4 + $0x170] ss:$8 sps:$4 sm:$0xff]  }
  0x42   :  { %v2422_v51 = vld [vmem:[#allocation4 + $0x174] ss:$8 sps:$4 sm:$0xff]   ;;  %v2425_v52 = vld [vmem:[#allocation4 + $0x164] ss:$8 sps:$4 sm:$0xff]   ;;  %v2423_v53 = vld [vmem:[#allocation4 + $0x160] ss:$8 sps:$4 sm:$0xff]  }
  0x43   :  { %205 = vmatpush1.bf16.msra.mxu0 %v2361_v13  ;;  %452 = vmatpush1.bf16.msra.mxu1 %v2383_v22  ;;  %v2428_v54 = vld [vmem:[#allocation4 + $0x154] ss:$8 sps:$4 sm:$0xff]   ;;  %v2426_v55 = vld [vmem:[#allocation4 + $0x150] ss:$8 sps:$4 sm:$0xff]   ;;  %v2431_v56 = vld [vmem:[#allocation4 + $0x144] ss:$8 sps:$4 sm:$0xff]   ;;  %v102_v13 = vlaneseq }
  0x44   :  { %206 = vmatprep.subr.bf16.mxu0 %v2362_v15  ;;  %453 = vmatprep.subr.bf16.mxu1 %v2384_v24  ;;  %v2429_v57 = vld [vmem:[#allocation4 + $0x140] ss:$8 sps:$4 sm:$0xff]   ;;  %v2434_v58 = vld [vmem:[#allocation4 + $0x134] ss:$8 sps:$4 sm:$0xff]   ;;  %v2432_v59 = vld [vmem:[#allocation4 + $0x130] ss:$8 sps:$4 sm:$0xff]  }
  0x45   :  { %v2437_v60 = vld [vmem:[#allocation4 + $0x124] ss:$8 sps:$4 sm:$0xff]   ;;  %v2435_v61 = vld [vmem:[#allocation4 + $0x120] ss:$8 sps:$4 sm:$0xff]   ;;  %v2440_v62 = vld [vmem:[#allocation4 + $0x114] ss:$8 sps:$4 sm:$0xff]  }
  0x46   :  { %v2438_v63 = vld [vmem:[#allocation4 + $0x110] ss:$8 sps:$4 sm:$0xff]   ;;  %v2443_v1 = vld [vmem:[#allocation4 + $0x104] ss:$8 sps:$4 sm:$0xff]   ;;  %v2441_v2 = vld [vmem:[#allocation4 + $0x100] ss:$8 sps:$4 sm:$0xff]  }
  0x47   :  { %207 = vmatpush1.bf16.msra.mxu0 %v2364_v17  ;;  %454 = vmatpush1.bf16.msra.mxu1 %v2386_v26  ;;  %v2446_v3 = vld [vmem:[#allocation4 + $0x1f4] ss:$8 sps:$4 sm:$0xff]   ;;  %v2444_v4 = vld [vmem:[#allocation4 + $0x1f0] ss:$8 sps:$4 sm:$0xff]   ;;  %v2449_v5 = vld [vmem:[#allocation4 + $0x1e4] ss:$8 sps:$4 sm:$0xff]  }
  0x48   :  { %208 = vmatprep.subr.bf16.mxu0 %v2365_v19  ;;  %455 = vmatprep.subr.bf16.mxu1 %v2387_v28  ;;  %v2447_v6 = vld [vmem:[#allocation4 + $0x1e0] ss:$8 sps:$4 sm:$0xff]   ;;  %v2452_v7 = vld [vmem:[#allocation4 + $0x1d4] ss:$8 sps:$4 sm:$0xff]   ;;  %v2450_v8 = vld [vmem:[#allocation4 + $0x1d0] ss:$8 sps:$4 sm:$0xff]  }
  0x49   :  { %v2455_v9 = vld [vmem:[#allocation4 + $0x1c4] ss:$8 sps:$4 sm:$0xff]   ;;  %v2453_v10 = vld [vmem:[#allocation4 + $0x1c0] ss:$8 sps:$4 sm:$0xff]   ;;  %v2458_v11 = vld [vmem:[#allocation4 + $0x1b4] ss:$8 sps:$4 sm:$0xff]  }
  0x4a   :  { %v2456_v12 = vld [vmem:[#allocation4 + $0x1b0] ss:$8 sps:$4 sm:$0xff]   ;;  %v2854_v14 = vshrl.u32 %v102_v13, 7  ;;  %v2860_v16 = vld [vmem:[%s2903_s5 + $0x8] sm:$0xff]  ;;  %v2865_v17 = vld [vmem:[%s2903_s5] sm:$0xff] }
  0x4b   :  { %209 = vmatpush1.bf16.msra.mxu0 %v2367_v21  ;;  %456 = vmatpush1.bf16.msra.mxu1 %v2389_v29 }
  0x4c   :  { %210 = vmatprep.subr.bf16.mxu0 %v2368_v23  ;;  %457 = vmatprep.subr.bf16.mxu1 %v2390_v30  ;;  %v104_v15 = vsub.s32 0, %v2854_v14 }
  0x4e   :  { %v109_v19 = vrot.slane %v2860_v16, %v104_v15  ;;  %v105_v20 = vrot.slane %v2865_v17, %v104_v15 }
  0x4f   :  { %211 = vmatpush1.bf16.msra.mxu0 %v2370_v25  ;;  %458 = vmatpush1.bf16.msra.mxu1 %v2392_v31 }
  0x50   :  { %459 = vmatprep.subr.bf16.mxu1 %v2393_v32  ;;  %695 = vmatprep.subr.bf16.mxu0 %v2422_v51  ;;  %v2485_v51 = vld [vmem:[#allocation4 + $0x224] ss:$8 sps:$4 sm:$0xff]  }
  0x52   :  { %229 = vmatmul.mubr.bf16.vlgmr.msra.gmra.mxu0 %v2851_v27 }
  0x53   :  { %460 = vmatpush1.bf16.msra.mxu1 %v2395_v33  ;;  %696 = vmatpush1.bf16.msra.mxu0 %v2420_v50  ;;  %v2480_v50 = vld [vmem:[#allocation4 + $0x230] ss:$8 sps:$4 sm:$0xff]  }
  0x54   :  { %461 = vmatprep.subr.bf16.mxu1 %v2396_v34  ;;  %697 = vmatprep.subr.bf16.mxu0 %v2425_v52  ;;  %v2483_v52 = vld [vmem:[#allocation4 + $0x220] ss:$8 sps:$4 sm:$0xff]  }
  0x57   :  { %462 = vmatpush2.bf16.msra.mxu1 %v2398_v35  ;;  %698 = vmatpush1.bf16.msra.mxu0 %v2423_v53  ;;  %v2461_v35 = vld [vmem:[#allocation4 + $0x1a4] ss:$8 sps:$4 sm:$0xff]   ;;  %v2488_v53 = vld [vmem:[#allocation4 + $0x214] ss:$8 sps:$4 sm:$0xff]  }
  0x58   :  { %463 = vmatprep.subr.bf16.mxu1 %v2399_v36  ;;  %699 = vmatprep.subr.bf16.mxu0 %v2428_v54  ;;  %v2459_v36 = vld [vmem:[#allocation4 + $0x1a0] ss:$8 sps:$4 sm:$0xff]   ;;  %v2486_v54 = vld [vmem:[#allocation4 + $0x210] ss:$8 sps:$4 sm:$0xff]  }
  0x5b   :  { %464 = vmatpush2.bf16.msra.mxu1 %v2401_v37  ;;  %700 = vmatpush1.bf16.msra.mxu0 %v2426_v55  ;;  %v2464_v37 = vld [vmem:[#allocation4 + $0x194] ss:$8 sps:$4 sm:$0xff]   ;;  %v2491_v55 = vld [vmem:[#allocation4 + $0x204] ss:$8 sps:$4 sm:$0xff]  }
  0x5c   :  { %465 = vmatprep.subr.bf16.mxu1 %v2402_v38  ;;  %701 = vmatprep.subr.bf16.mxu0 %v2431_v56  ;;  %v2462_v38 = vld [vmem:[#allocation4 + $0x190] ss:$8 sps:$4 sm:$0xff]   ;;  %v2489_v56 = vld [vmem:[#allocation4 + $0x200] ss:$8 sps:$4 sm:$0xff]  }
  0x5f   :  { %466 = vmatpush2.bf16.msra.mxu1 %v2404_v39  ;;  %702 = vmatpush1.bf16.msra.mxu0 %v2429_v57  ;;  %v2467_v39 = vld [vmem:[#allocation4 + $0x184] ss:$8 sps:$4 sm:$0xff]   ;;  %v2494_v57 = vld [vmem:[#allocation4 + $0x2f4] ss:$8 sps:$4 sm:$0xff]  }
  0x60   :  { %467 = vmatprep.subr.bf16.mxu1 %v2405_v40  ;;  %703 = vmatprep.subr.bf16.mxu0 %v2434_v58  ;;  %v2465_v40 = vld [vmem:[#allocation4 + $0x180] ss:$8 sps:$4 sm:$0xff]   ;;  %v2492_v58 = vld [vmem:[#allocation4 + $0x2f0] ss:$8 sps:$4 sm:$0xff]  }
  0x63   :  { %468 = vmatpush2.bf16.msra.mxu1 %v2407_v41  ;;  %704 = vmatpush1.bf16.msra.mxu0 %v2432_v59  ;;  %v2468_v41 = vld [vmem:[#allocation4 + $0x270] ss:$8 sps:$4 sm:$0xff]   ;;  %v2497_v59 = vld [vmem:[#allocation4 + $0x2e4] ss:$8 sps:$4 sm:$0xff]  }
  0x64   :  { %469 = vmatprep.subr.bf16.mxu1 %v2408_v42  ;;  %705 = vmatprep.subr.bf16.mxu0 %v2437_v60  ;;  %v2470_v42 = vld [vmem:[#allocation4 + $0x274] ss:$8 sps:$4 sm:$0xff]   ;;  %v2495_v60 = vld [vmem:[#allocation4 + $0x2e0] ss:$8 sps:$4 sm:$0xff]  }
  0x67   :  { %470 = vmatpush2.bf16.msra.mxu1 %v2410_v43  ;;  %706 = vmatpush1.bf16.msra.mxu0 %v2435_v61  ;;  %v2473_v43 = vld [vmem:[#allocation4 + $0x264] ss:$8 sps:$4 sm:$0xff]   ;;  %v2500_v61 = vld [vmem:[#allocation4 + $0x2d4] ss:$8 sps:$4 sm:$0xff]  }
  0x68   :  { %471 = vmatprep.subr.bf16.mxu1 %v2411_v44  ;;  %707 = vmatprep.subr.bf16.mxu0 %v2440_v62  ;;  %v2471_v44 = vld [vmem:[#allocation4 + $0x260] ss:$8 sps:$4 sm:$0xff]   ;;  %v2498_v62 = vld [vmem:[#allocation4 + $0x2d0] ss:$8 sps:$4 sm:$0xff]  }
  0x6b   :  { %472 = vmatpush2.bf16.msra.mxu1 %v2413_v45  ;;  %708 = vmatpush1.bf16.msra.mxu0 %v2438_v63  ;;  %v2476_v45 = vld [vmem:[#allocation4 + $0x254] ss:$8 sps:$4 sm:$0xff]   ;;  %v2503_v63 = vld [vmem:[#allocation4 + $0x2c4] ss:$8 sps:$4 sm:$0xff]  }
  0x6c   :  { %473 = vmatprep.subr.bf16.mxu1 %v2414_v46  ;;  %709 = vmatprep.subr.bf16.mxu0 %v2443_v1  ;;  %v2474_v46 = vld [vmem:[#allocation4 + $0x250] ss:$8 sps:$4 sm:$0xff]   ;;  %v2501_v1 = vld [vmem:[#allocation4 + $0x2c0] ss:$8 sps:$4 sm:$0xff]  }
  0x6f   :  { %474 = vmatpush2.bf16.msra.mxu1 %v2416_v47  ;;  %710 = vmatpush1.bf16.msra.mxu0 %v2441_v2  ;;  %v2479_v47 = vld [vmem:[#allocation4 + $0x244] ss:$8 sps:$4 sm:$0xff]   ;;  %v2506_v2 = vld [vmem:[#allocation4 + $0x2b4] ss:$8 sps:$4 sm:$0xff]  }
  0x70   :  { %475 = vmatprep.subr.bf16.mxu1 %v2417_v48  ;;  %711 = vmatprep.subr.bf16.mxu0 %v2446_v3  ;;  %v2477_v48 = vld [vmem:[#allocation4 + $0x240] ss:$8 sps:$4 sm:$0xff]   ;;  %v2504_v3 = vld [vmem:[#allocation4 + $0x2b0] ss:$8 sps:$4 sm:$0xff]  }
  0x73   :  { %476 = vmatpush2.bf16.msra.mxu1 %v2419_v49  ;;  %712 = vmatpush2.bf16.msra.mxu0 %v2444_v4  ;;  %v2482_v49 = vld [vmem:[#allocation4 + $0x234] ss:$8 sps:$4 sm:$0xff]   ;;  %v279_v4 = vsub.s32 1, %v2854_v14 }
  0x74   :  { %713 = vmatprep.subr.bf16.mxu0 %v2449_v5  ;;  %945 = vmatprep.subr.bf16.mxu1 %v2470_v42  ;;  %v2536_v42 = vld [vmem:[#allocation6 + $0x14] ss:$8 sps:$4 sm:$0xff]  }
  0x77   :  { %714 = vmatpush2.bf16.msra.mxu0 %v2447_v6  ;;  %v284_v6 = vrot.slane %v2860_v16, %v279_v4 }
  0x78   :  { %715 = vmatprep.subr.bf16.mxu0 %v2452_v7  ;;  %v280_v7 = vrot.slane %v2865_v17, %v279_v4  ;;  %v2575_v4 = vld [vmem:[#allocation4 + $0x3c4] ss:$8 sps:$4 sm:$0xff]  }
  0x7b   :  { %716 = vmatpush2.bf16.msra.mxu0 %v2450_v8 }
  0x7c   :  { %717 = vmatprep.subr.bf16.mxu0 %v2455_v9 }
  0x7f   :  { %718 = vmatpush2.bf16.msra.mxu0 %v2453_v10 }
  0x80   :  { %719 = vmatprep.subr.bf16.mxu0 %v2458_v11 }
  0x83   :  { %720 = vmatpush2.bf16.msra.mxu0 %v2456_v12 }
  0x84   :  { %721 = vmatprep.subr.bf16.mxu0 %v2461_v35  ;;  %v2522_v35 = vld [vmem:[#allocation6 + $0x50] ss:$8 sps:$4 sm:$0xff]  }
  0x87   :  { %722 = vmatpush2.bf16.msra.mxu0 %v2459_v36  ;;  %v2527_v36 = vld [vmem:[#allocation6 + $0x44] ss:$8 sps:$4 sm:$0xff]  }
  0x88   :  { %723 = vmatprep.subr.bf16.mxu0 %v2464_v37  ;;  %v2525_v37 = vld [vmem:[#allocation6 + $0x40] ss:$8 sps:$4 sm:$0xff]  }
  0x8b   :  { %724 = vmatpush2.bf16.msra.mxu0 %v2462_v38  ;;  %v2530_v38 = vld [vmem:[#allocation6 + $0x34] ss:$8 sps:$4 sm:$0xff]  }
  0x8c   :  { %725 = vmatprep.subr.bf16.mxu0 %v2467_v39  ;;  %v2528_v39 = vld [vmem:[#allocation6 + $0x30] ss:$8 sps:$4 sm:$0xff]  }
  0x8f   :  { %726 = vmatpush2.bf16.msra.mxu0 %v2465_v40  ;;  %v2533_v40 = vld [vmem:[#allocation6 + $0x24] ss:$8 sps:$4 sm:$0xff]  }
 0x112   :  { %v230_v18 = vpop.f32.mrf.mxu0 }
 0x113   :  { %v231_v25 = vadd.f32 %v230_v18, %v105_v20 }
 0x114   :  { %v232_v21 = vpop.f32.mrf.mxu0 }
 0x115   :  { %v233_v23 = vadd.f32 %v232_v21, %v109_v19  ;;  %v239_v32 = vmax.f32 %v231_v25, 0.0  ;;  %v2507_v25 = vld [vmem:[#allocation4 + $0x2a0] ss:$8 sps:$4 sm:$0xff]  }
 0x116   :  { %v234_v22 = vpop.f32.mrf.mxu0 }
 0x117   :  { %v235_v24 = vadd.f32 %v234_v22, %v105_v20  ;;  %v240_v30 = vmax.f32 %v233_v23, 0.0 }
 0x118   :  { %v236_v26 = vpop.f32.mrf.mxu0 }
 0x119   :  { %v237_v28 = vadd.f32 %v236_v26, %v109_v19  ;;  %v241_v29 = vmax.f32 %v235_v24, 0.0  ;;  %v2509_v24 = vld [vmem:[#allocation4 + $0x2a4] ss:$8 sps:$4 sm:$0xff]   ;;  %v2512_v26 = vld [vmem:[#allocation4 + $0x294] ss:$8 sps:$4 sm:$0xff]  }
 0x11b   :  { %v242_v31 = vmax.f32 %v237_v28, 0.0  ;;  %v243_v34 = vpack.c.bf16 %v241_v29, %v239_v32  ;;  %v2510_v28 = vld [vmem:[#allocation4 + $0x290] ss:$8 sps:$4 sm:$0xff]   ;;  %v2515_v29 = vld [vmem:[#allocation4 + $0x284] ss:$8 sps:$4 sm:$0xff]  }
 0x11c   :  { %v2518_v32 = vld [vmem:[#allocation6 + $0x74] ss:$8 sps:$4 sm:$0xff]  }
 0x11d   :  { %v244_v33 = vpack.c.bf16 %v242_v31, %v240_v30  ;;  %v2513_v30 = vld [vmem:[#allocation4 + $0x280] ss:$8 sps:$4 sm:$0xff]   ;;  %v2516_v31 = vld [vmem:[#allocation6 + $0x70] ss:$8 sps:$4 sm:$0xff]   ;;  %1123 = vmatprep.subr.bf16.mxu0 %v2518_v32 }
 0x11e   :  { %v2582_v32 = vld [vmem:[#allocation4 + $0x390] ss:$8 sps:$4 sm:$0xff]  }
 0x11f   :  { %477 = vmatprep.mubr.bf16.mxu1 %v244_v33  ;;  %v2521_v33 = vld [vmem:[#allocation6 + $0x64] ss:$8 sps:$4 sm:$0xff]  }
 0x120   :  { %478 = vmatmul.mubr.bf16.vlgmr.msra.gmra.mxu1 %v243_v34  ;;  %v2519_v34 = vld [vmem:[#allocation6 + $0x60] ss:$8 sps:$4 sm:$0xff]  }
 0x121   :  { %946 = vmatpush1.bf16.msra.mxu1 %v2468_v41  ;;  %v2531_v41 = vld [vmem:[#allocation6 + $0x20] ss:$8 sps:$4 sm:$0xff]  }
 0x122   :  { %947 = vmatprep.subr.bf16.mxu1 %v2473_v43  ;;  %v2534_v43 = vld [vmem:[#allocation6 + $0x10] ss:$8 sps:$4 sm:$0xff]  }
 0x125   :  { %948 = vmatpush1.bf16.msra.mxu1 %v2471_v44  ;;  %v2539_v44 = vld [vmem:[#allocation6 + $0x4] ss:$8 sps:$4 sm:$0xff]  }
 0x126   :  { %949 = vmatprep.subr.bf16.mxu1 %v2476_v45  ;;  %v2537_v45 = vld [vmem:[#allocation6] ss:$8 sps:$4 sm:$0xff]  }
 0x129   :  { %950 = vmatpush1.bf16.msra.mxu1 %v2474_v46  ;;  %v2542_v46 = vld [vmem:[#allocation4 + $0x374] ss:$8 sps:$4 sm:$0xff]  }
 0x12a   :  { %951 = vmatprep.subr.bf16.mxu1 %v2479_v47  ;;  %v2540_v47 = vld [vmem:[#allocation4 + $0x370] ss:$8 sps:$4 sm:$0xff]  }
 0x12d   :  { %952 = vmatpush1.bf16.msra.mxu1 %v2477_v48  ;;  %v2545_v48 = vld [vmem:[#allocation4 + $0x364] ss:$8 sps:$4 sm:$0xff]  }
 0x12e   :  { %953 = vmatprep.subr.bf16.mxu1 %v2482_v49  ;;  %v2543_v49 = vld [vmem:[#allocation4 + $0x360] ss:$8 sps:$4 sm:$0xff]  }
 0x131   :  { %954 = vmatpush1.bf16.msra.mxu1 %v2480_v50  ;;  %v2548_v50 = vld [vmem:[#allocation4 + $0x354] ss:$8 sps:$4 sm:$0xff]  }
 0x132   :  { %955 = vmatprep.subr.bf16.mxu1 %v2485_v51  ;;  %v2546_v51 = vld [vmem:[#allocation4 + $0x350] ss:$8 sps:$4 sm:$0xff]  }
 0x135   :  { %956 = vmatpush1.bf16.msra.mxu1 %v2483_v52  ;;  %v2551_v52 = vld [vmem:[#allocation4 + $0x344] ss:$8 sps:$4 sm:$0xff]  }
 0x136   :  { %957 = vmatprep.subr.bf16.mxu1 %v2488_v53  ;;  %v2549_v53 = vld [vmem:[#allocation4 + $0x340] ss:$8 sps:$4 sm:$0xff]  }
 0x139   :  { %958 = vmatpush1.bf16.msra.mxu1 %v2486_v54  ;;  %v2554_v54 = vld [vmem:[#allocation4 + $0x334] ss:$8 sps:$4 sm:$0xff]  }
 0x13a   :  { %959 = vmatprep.subr.bf16.mxu1 %v2491_v55  ;;  %v2552_v55 = vld [vmem:[#allocation4 + $0x330] ss:$8 sps:$4 sm:$0xff]  }
 0x13d   :  { %960 = vmatpush1.bf16.msra.mxu1 %v2489_v56  ;;  %v2557_v56 = vld [vmem:[#allocation4 + $0x324] ss:$8 sps:$4 sm:$0xff]  }
 0x13e   :  { %961 = vmatprep.subr.bf16.mxu1 %v2494_v57  ;;  %v2555_v57 = vld [vmem:[#allocation4 + $0x320] ss:$8 sps:$4 sm:$0xff]  }
 0x141   :  { %962 = vmatpush2.bf16.msra.mxu1 %v2492_v58  ;;  %v2558_v58 = vld [vmem:[#allocation4 + $0x310] ss:$8 sps:$4 sm:$0xff]  }
 0x142   :  { %963 = vmatprep.subr.bf16.mxu1 %v2497_v59  ;;  %v2563_v59 = vld [vmem:[#allocation4 + $0x304] ss:$8 sps:$4 sm:$0xff]  }
 0x145   :  { %964 = vmatpush2.bf16.msra.mxu1 %v2495_v60  ;;  %v2561_v60 = vld [vmem:[#allocation4 + $0x300] ss:$8 sps:$4 sm:$0xff]  }
 0x146   :  { %965 = vmatprep.subr.bf16.mxu1 %v2500_v61  ;;  %v2566_v61 = vld [vmem:[#allocation4 + $0x3f4] ss:$8 sps:$4 sm:$0xff]  }
 0x149   :  { %966 = vmatpush2.bf16.msra.mxu1 %v2498_v62  ;;  %v2564_v62 = vld [vmem:[#allocation4 + $0x3f0] ss:$8 sps:$4 sm:$0xff]  }
 0x14a   :  { %967 = vmatprep.subr.bf16.mxu1 %v2503_v63  ;;  %v2569_v63 = vld [vmem:[#allocation4 + $0x3e4] ss:$8 sps:$4 sm:$0xff]  }
 0x14d   :  { %968 = vmatpush2.bf16.msra.mxu1 %v2501_v1  ;;  %v2567_v1 = vld [vmem:[#allocation4 + $0x3e0] ss:$8 sps:$4 sm:$0xff]  }
 0x14e   :  { %969 = vmatprep.subr.bf16.mxu1 %v2506_v2  ;;  %v2572_v2 = vld [vmem:[#allocation4 + $0x3d4] ss:$8 sps:$4 sm:$0xff]  }
 0x151   :  { %970 = vmatpush2.bf16.msra.mxu1 %v2504_v3  ;;  %v2570_v3 = vld [vmem:[#allocation4 + $0x3d0] ss:$8 sps:$4 sm:$0xff]  }
 0x152   :  { %971 = vmatprep.subr.bf16.mxu1 %v2509_v24 }
 0x155   :  { %972 = vmatpush2.bf16.msra.mxu1 %v2507_v25 }
 0x156   :  { %973 = vmatprep.subr.bf16.mxu1 %v2512_v26 }
 0x159   :  { %974 = vmatpush2.bf16.msra.mxu1 %v2510_v28 }
 0x15a   :  { %975 = vmatprep.subr.bf16.mxu1 %v2515_v29  ;;  %v2581_v29 = vld [vmem:[#allocation4 + $0x3a4] ss:$8 sps:$4 sm:$0xff]  }
 0x15d   :  { %976 = vmatpush2.bf16.msra.mxu1 %v2513_v30  ;;  %v2579_v30 = vld [vmem:[#allocation4 + $0x3a0] ss:$8 sps:$4 sm:$0xff]  }
 0x1e0   :  { %v479_v5 = vpop.f32.mrf.mxu1 }
 0x1e1   :  { %v480_v12 = vadd.f32 %v479_v5, %v280_v7  ;;  %v2573_v5 = vld [vmem:[#allocation4 + $0x3c0] ss:$8 sps:$4 sm:$0xff]  }
 0x1e2   :  { %v481_v8 = vpop.f32.mrf.mxu1 }
 0x1e3   :  { %v482_v10 = vadd.f32 %v481_v8, %v284_v6  ;;  %v488_v21 = vmax.f32 %v480_v12, 0.0  ;;  %v529_v8 = vsub.s32 2, %v2854_v14 }
 0x1e4   :  { %v483_v9 = vpop.f32.mrf.mxu1 }
 0x1e5   :  { %v484_v11 = vadd.f32 %v483_v9, %v280_v7  ;;  %v489_v19 = vmax.f32 %v482_v10, 0.0  ;;  %v2576_v7 = vld [vmem:[#allocation4 + $0x3b0] ss:$8 sps:$4 sm:$0xff]   ;;  %v534_v10 = vrot.slane %v2860_v16, %v529_v8 }
 0x1e6   :  { %v485_v13 = vpop.f32.mrf.mxu1 }
 0x1e7   :  { %v486_v15 = vadd.f32 %v485_v13, %v284_v6  ;;  %v490_v18 = vmax.f32 %v484_v11, 0.0  ;;  %v2578_v6 = vld [vmem:[#allocation4 + $0x3b4] ss:$8 sps:$4 sm:$0xff]   ;;  %v530_v11 = vrot.slane %v2865_v17, %v529_v8 }
 0x1e9   :  { %v491_v20 = vmax.f32 %v486_v15, 0.0  ;;  %v492_v23 = vpack.c.bf16 %v490_v18, %v488_v21 }
 0x1eb   :  { %v493_v22 = vpack.c.bf16 %v491_v20, %v489_v19 }
 0x1ed   :  { %727 = vmatprep.mubr.bf16.mxu0 %v493_v22 }
 0x1ee   :  { %728 = vmatmul.mubr.bf16.vlgmr.msra.gmra.mxu0 %v492_v23 }
 0x1ef   :  { %1155 = vmatprep.mubr.bf16.mxu0 %v2794_v0  ;;  %1124 = vmatpush1.bf16.msra.mxu0 %v2516_v31  ;;  %v2524_v0 = vld [vmem:[#allocation6 + $0x54] ss:$8 sps:$4 sm:$0xff]  }
 0x1f0   :  { %1125 = vmatprep.subr.bf16.mxu0 %v2521_v33  ;;  %v2584_v31 = vld [vmem:[#allocation4 + $0x394] ss:$8 sps:$4 sm:$0xff]   ;;  %v2587_v33 = vld [vmem:[#allocation4 + $0x384] ss:$8 sps:$4 sm:$0xff]  }
 0x1f3   :  { %1126 = vmatpush1.bf16.msra.mxu0 %v2519_v34  ;;  %v2585_v34 = vld [vmem:[#allocation4 + $0x380] ss:$8 sps:$4 sm:$0xff]  }
 0x1f4   :  { %1127 = vmatprep.subr.bf16.mxu0 %v2524_v0  ;;  %v2588_v0 = vld [vmem:[#allocation4 + $0x470] ss:$8 sps:$4 sm:$0xff]  }
 0x1f7   :  { %1128 = vmatpush1.bf16.msra.mxu0 %v2522_v35  ;;  %v2590_v35 = vld [vmem:[#allocation4 + $0x474] ss:$8 sps:$4 sm:$0xff]  }
 0x1f8   :  { %1129 = vmatprep.subr.bf16.mxu0 %v2527_v36  ;;  %v2593_v36 = vld [vmem:[#allocation4 + $0x464] ss:$8 sps:$4 sm:$0xff]   ;;  %1588 = vmatprep.subr.bf16.mxu1 %v2590_v35  ;;  %v2654_v35 = vld [vmem:[#allocation4 + $0x510] ss:$8 sps:$4 sm:$0xff]  }
 0x1fb   :  { %1130 = vmatpush1.bf16.msra.mxu0 %v2525_v37  ;;  %v2591_v37 = vld [vmem:[#allocation4 + $0x460] ss:$8 sps:$4 sm:$0xff]  }
 0x1fc   :  { %1131 = vmatprep.subr.bf16.mxu0 %v2530_v38  ;;  %v2596_v38 = vld [vmem:[#allocation4 + $0x454] ss:$8 sps:$4 sm:$0xff]  }
 0x1ff   :  { %1132 = vmatpush1.bf16.msra.mxu0 %v2528_v39  ;;  %v2594_v39 = vld [vmem:[#allocation4 + $0x450] ss:$8 sps:$4 sm:$0xff]  }
 0x200   :  { %1133 = vmatprep.subr.bf16.mxu0 %v2533_v40  ;;  %v2599_v40 = vld [vmem:[#allocation4 + $0x444] ss:$8 sps:$4 sm:$0xff]  }
 0x203   :  { %1134 = vmatpush1.bf16.msra.mxu0 %v2531_v41  ;;  %v2597_v41 = vld [vmem:[#allocation4 + $0x440] ss:$8 sps:$4 sm:$0xff]  }
 0x204   :  { %1135 = vmatprep.subr.bf16.mxu0 %v2536_v42  ;;  %v2602_v42 = vld [vmem:[#allocation4 + $0x434] ss:$8 sps:$4 sm:$0xff]  }
 0x207   :  { %1136 = vmatpush1.bf16.msra.mxu0 %v2534_v43  ;;  %v2600_v43 = vld [vmem:[#allocation4 + $0x430] ss:$8 sps:$4 sm:$0xff]  }
 0x208   :  { %1137 = vmatprep.subr.bf16.mxu0 %v2539_v44  ;;  %v2605_v44 = vld [vmem:[#allocation4 + $0x424] ss:$8 sps:$4 sm:$0xff]  }
 0x20b   :  { %1138 = vmatpush1.bf16.msra.mxu0 %v2537_v45  ;;  %v2603_v45 = vld [vmem:[#allocation4 + $0x420] ss:$8 sps:$4 sm:$0xff]  }
 0x20c   :  { %1326 = vmatprep.subr.bf16.mxu0 %v2542_v46  ;;  %v2608_v46 = vld [vmem:[#allocation4 + $0x414] ss:$8 sps:$4 sm:$0xff]  }
 0x20e   :  { %1156 = vmatmul.mubr.bf16.vlgmr.msra.gmra.mxu0 %v2851_v27  ;;  %v2560_v27 = vld [vmem:[#allocation4 + $0x314] ss:$8 sps:$4 sm:$0xff]  }
 0x20f   :  { %1327 = vmatpush1.bf16.msra.mxu0 %v2540_v47  ;;  %v2606_v47 = vld [vmem:[#allocation4 + $0x410] ss:$8 sps:$4 sm:$0xff]  }
 0x210   :  { %1328 = vmatprep.subr.bf16.mxu0 %v2545_v48  ;;  %v2611_v48 = vld [vmem:[#allocation4 + $0x404] ss:$8 sps:$4 sm:$0xff]  }
 0x213   :  { %1329 = vmatpush1.bf16.msra.mxu0 %v2543_v49  ;;  %v2609_v49 = vld [vmem:[#allocation4 + $0x400] ss:$8 sps:$4 sm:$0xff]  }
 0x214   :  { %1330 = vmatprep.subr.bf16.mxu0 %v2548_v50  ;;  %v2614_v50 = vld [vmem:[#allocation4 + $0x4f4] ss:$8 sps:$4 sm:$0xff]  }
 0x217   :  { %1331 = vmatpush1.bf16.msra.mxu0 %v2546_v51  ;;  %v2612_v51 = vld [vmem:[#allocation4 + $0x4f0] ss:$8 sps:$4 sm:$0xff]  }
 0x218   :  { %1332 = vmatprep.subr.bf16.mxu0 %v2551_v52  ;;  %v2617_v52 = vld [vmem:[#allocation4 + $0x4e4] ss:$8 sps:$4 sm:$0xff]  }
 0x21b   :  { %1333 = vmatpush1.bf16.msra.mxu0 %v2549_v53  ;;  %v2615_v53 = vld [vmem:[#allocation4 + $0x4e0] ss:$8 sps:$4 sm:$0xff]  }
 0x21c   :  { %1334 = vmatprep.subr.bf16.mxu0 %v2554_v54  ;;  %v2620_v54 = vld [vmem:[#allocation4 + $0x4d4] ss:$8 sps:$4 sm:$0xff]  }
 0x21f   :  { %1335 = vmatpush1.bf16.msra.mxu0 %v2552_v55  ;;  %v2618_v55 = vld [vmem:[#allocation4 + $0x4d0] ss:$8 sps:$4 sm:$0xff]  }
 0x220   :  { %1336 = vmatprep.subr.bf16.mxu0 %v2557_v56  ;;  %v2623_v56 = vld [vmem:[#allocation4 + $0x4c4] ss:$8 sps:$4 sm:$0xff]  }
 0x223   :  { %1337 = vmatpush1.bf16.msra.mxu0 %v2555_v57  ;;  %v2621_v57 = vld [vmem:[#allocation4 + $0x4c0] ss:$8 sps:$4 sm:$0xff]  }
 0x224   :  { %1338 = vmatprep.subr.bf16.mxu0 %v2560_v27  ;;  %v779_v27 = vsub.s32 3, %v2854_v14 }
 0x227   :  { %1339 = vmatpush1.bf16.msra.mxu0 %v2558_v58 }
 0x228   :  { %1340 = vmatprep.subr.bf16.mxu0 %v2563_v59  ;;  %v784_v59 = vrot.slane %v2860_v16, %v779_v27 }
 0x22b   :  { %1341 = vmatpush1.bf16.msra.mxu0 %v2561_v60  ;;  %v780_v60 = vrot.slane %v2865_v17, %v779_v27 }
 0x22c   :  { %1342 = vmatprep.subr.bf16.mxu0 %v2566_v61 }
 0x22f   :  { %1343 = vmatpush2.bf16.msra.mxu0 %v2564_v62 }
 0x230   :  { %1344 = vmatprep.subr.bf16.mxu0 %v2569_v63 }
 0x233   :  { %1345 = vmatpush2.bf16.msra.mxu0 %v2567_v1 }
 0x234   :  { %1346 = vmatprep.subr.bf16.mxu0 %v2572_v2 }
 0x237   :  { %1347 = vmatpush2.bf16.msra.mxu0 %v2570_v3 }
 0x238   :  { %1348 = vmatprep.subr.bf16.mxu0 %v2575_v4 }
 0x23b   :  { %1349 = vmatpush2.bf16.msra.mxu0 %v2573_v5 }
 0x23c   :  { %1350 = vmatprep.subr.bf16.mxu0 %v2578_v6 }
 0x23f   :  { %1351 = vmatpush2.bf16.msra.mxu0 %v2576_v7 }
 0x240   :  { %1352 = vmatprep.subr.bf16.mxu0 %v2581_v29  ;;  %v2647_v29 = vld [vmem:[#allocation4 + $0x544] ss:$8 sps:$4 sm:$0xff]  }
 0x243   :  { %1353 = vmatpush2.bf16.msra.mxu0 %v2579_v30  ;;  %v2645_v30 = vld [vmem:[#allocation4 + $0x540] ss:$8 sps:$4 sm:$0xff]  }
 0x244   :  { %1354 = vmatprep.subr.bf16.mxu0 %v2584_v31  ;;  %v2650_v31 = vld [vmem:[#allocation4 + $0x534] ss:$8 sps:$4 sm:$0xff]  }
 0x247   :  { %1355 = vmatpush2.bf16.msra.mxu0 %v2582_v32  ;;  %v2648_v32 = vld [vmem:[#allocation4 + $0x530] ss:$8 sps:$4 sm:$0xff]  }
 0x248   :  { %1356 = vmatprep.subr.bf16.mxu0 %v2587_v33  ;;  %v2653_v33 = vld [vmem:[#allocation4 + $0x524] ss:$8 sps:$4 sm:$0xff]  }
 0x24b   :  { %1357 = vmatpush2.bf16.msra.mxu0 %v2585_v34  ;;  %v2651_v34 = vld [vmem:[#allocation4 + $0x520] ss:$8 sps:$4 sm:$0xff]  }
 0x2ae   :  { %v729_v9 = vpop.f32.mrf.mxu0 }
 0x2af   :  { %v730_v19 = vadd.f32 %v729_v9, %v530_v11 }
 0x2b0   :  { %v731_v12 = vpop.f32.mrf.mxu0 }
 0x2b1   :  { %v732_v15 = vadd.f32 %v731_v12, %v534_v10  ;;  %v738_v25 = vmax.f32 %v730_v19, 0.0  ;;  %v2624_v12 = vld [vmem:[#allocation4 + $0x4b0] ss:$8 sps:$4 sm:$0xff]  }
 0x2b2   :  { %v733_v13 = vpop.f32.mrf.mxu0  ;;  %v2630_v19 = vld [vmem:[#allocation4 + $0x490] ss:$8 sps:$4 sm:$0xff]  }
 0x2b3   :  { %v734_v18 = vadd.f32 %v733_v13, %v530_v11  ;;  %v739_v23 = vmax.f32 %v732_v15, 0.0  ;;  %v2626_v11 = vld [vmem:[#allocation4 + $0x4b4] ss:$8 sps:$4 sm:$0xff]   ;;  %v2629_v13 = vld [vmem:[#allocation4 + $0x4a4] ss:$8 sps:$4 sm:$0xff]  }
 0x2b4   :  { %v735_v20 = vpop.f32.mrf.mxu0  ;;  %v2627_v15 = vld [vmem:[#allocation4 + $0x4a0] ss:$8 sps:$4 sm:$0xff]  }
 0x2b5   :  { %v736_v21 = vadd.f32 %v735_v20, %v534_v10  ;;  %v740_v22 = vmax.f32 %v734_v18, 0.0  ;;  %v2632_v18 = vld [vmem:[#allocation4 + $0x494] ss:$8 sps:$4 sm:$0xff]   ;;  %v2635_v20 = vld [vmem:[#allocation4 + $0x484] ss:$8 sps:$4 sm:$0xff]  }
 0x2b7   :  { %v741_v24 = vmax.f32 %v736_v21, 0.0  ;;  %v742_v28 = vpack.c.bf16 %v740_v22, %v738_v25  ;;  %v2633_v21 = vld [vmem:[#allocation4 + $0x480] ss:$8 sps:$4 sm:$0xff]   ;;  %v2636_v22 = vld [vmem:[#allocation4 + $0x570] ss:$8 sps:$4 sm:$0xff]  }
 0x2b8   :  { %v2639_v25 = vld [vmem:[#allocation4 + $0x560] ss:$8 sps:$4 sm:$0xff]  }
 0x2b9   :  { %v743_v26 = vpack.c.bf16 %v741_v24, %v739_v23  ;;  %v2638_v23 = vld [vmem:[#allocation4 + $0x574] ss:$8 sps:$4 sm:$0xff]   ;;  %v2641_v24 = vld [vmem:[#allocation4 + $0x564] ss:$8 sps:$4 sm:$0xff]  }
 0x2ba   :  { %1838 = vmatprep.subr.bf16.mxu0 %v2638_v23  ;;  %v2689_v23 = vld [vmem:[#allocation7 + $0x28] sm:$0xff]  }
 0x2bb   :  { %977 = vmatprep.mubr.bf16.mxu1 %v743_v26  ;;  %v2644_v26 = vld [vmem:[#allocation4 + $0x554] ss:$8 sps:$4 sm:$0xff]  }
 0x2bc   :  { %978 = vmatmul.mubr.bf16.vlgmr.msra.gmra.mxu1 %v742_v28  ;;  %v2642_v28 = vld [vmem:[#allocation4 + $0x550] ss:$8 sps:$4 sm:$0xff]  }
 0x2bd   :  { %1589 = vmatpush1.bf16.msra.mxu1 %v2588_v0  ;;  %v2656_v0 = vld [vmem:[#allocation4 + $0x514] ss:$8 sps:$4 sm:$0xff]  }
 0x2be   :  { %1590 = vmatprep.subr.bf16.mxu1 %v2593_v36  ;;  %v2659_v36 = vld [vmem:[#allocation4 + $0x504] ss:$8 sps:$4 sm:$0xff]  }
 0x2c1   :  { %1591 = vmatpush1.bf16.msra.mxu1 %v2591_v37  ;;  %v2657_v37 = vld [vmem:[#allocation4 + $0x500] ss:$8 sps:$4 sm:$0xff]  }
 0x2c2   :  { %1592 = vmatprep.subr.bf16.mxu1 %v2596_v38  ;;  %v2662_v38 = vld [vmem:[#allocation4 + $0x5f4] ss:$8 sps:$4 sm:$0xff]  }
 0x2c5   :  { %1593 = vmatpush1.bf16.msra.mxu1 %v2594_v39  ;;  %v2660_v39 = vld [vmem:[#allocation4 + $0x5f0] ss:$8 sps:$4 sm:$0xff]  }
 0x2c6   :  { %1594 = vmatprep.subr.bf16.mxu1 %v2599_v40  ;;  %v2665_v40 = vld [vmem:[#allocation4 + $0x5e4] ss:$8 sps:$4 sm:$0xff]  }
 0x2c9   :  { %1595 = vmatpush1.bf16.msra.mxu1 %v2597_v41  ;;  %v2663_v41 = vld [vmem:[#allocation4 + $0x5e0] ss:$8 sps:$4 sm:$0xff]  }
 0x2ca   :  { %1596 = vmatprep.subr.bf16.mxu1 %v2602_v42  ;;  %v2668_v42 = vld [vmem:[#allocation4 + $0x5d4] ss:$8 sps:$4 sm:$0xff]  }
 0x2cd   :  { %1597 = vmatpush1.bf16.msra.mxu1 %v2600_v43  ;;  %v2666_v43 = vld [vmem:[#allocation4 + $0x5d0] ss:$8 sps:$4 sm:$0xff]  }
 0x2ce   :  { %1598 = vmatprep.subr.bf16.mxu1 %v2605_v44  ;;  %v2671_v44 = vld [vmem:[#allocation4 + $0x5c4] ss:$8 sps:$4 sm:$0xff]  }
 0x2d1   :  { %1599 = vmatpush1.bf16.msra.mxu1 %v2603_v45  ;;  %v2669_v45 = vld [vmem:[#allocation4 + $0x5c0] ss:$8 sps:$4 sm:$0xff]  }
 0x2d2   :  { %1600 = vmatprep.subr.bf16.mxu1 %v2608_v46  ;;  %v2674_v46 = vld [vmem:[#allocation4 + $0x5b4] ss:$8 sps:$4 sm:$0xff]  }
 0x2d5   :  { %1601 = vmatpush1.bf16.msra.mxu1 %v2606_v47  ;;  %v2672_v47 = vld [vmem:[#allocation4 + $0x5b0] ss:$8 sps:$4 sm:$0xff]  }
 0x2d6   :  { %1602 = vmatprep.subr.bf16.mxu1 %v2611_v48  ;;  %v1157_v48 = vpop.f32.mrf.mxu0 }
 0x2d9   :  { %1603 = vmatpush1.bf16.msra.mxu1 %v2609_v49  ;;  %v1159_v49 = vpop.f32.mrf.mxu0 }
 0x2da   :  { %1604 = vmatprep.subr.bf16.mxu1 %v2614_v50 }
 0x2db   :  { %v1161_v50 = vpop.f32.mrf.mxu0 }
 0x2dd   :  { %1605 = vmatpush2.bf16.msra.mxu1 %v2612_v51  ;;  %v1163_v51 = vpop.f32.mrf.mxu0 }
 0x2de   :  { %1606 = vmatprep.subr.bf16.mxu1 %v2617_v52 }
 0x2e1   :  { %1607 = vmatpush2.bf16.msra.mxu1 %v2615_v53  ;;  %v1371_v53 = vsub.s32 4, %v2854_v14 }
 0x2e2   :  { %1608 = vmatprep.subr.bf16.mxu1 %v2620_v54 }
 0x2e3   :  { %v1372_v27 = vrot.slane %v2865_v17, %v1371_v53 }
 0x2e5   :  { %1609 = vmatpush2.bf16.msra.mxu1 %v2618_v55 }
 0x2e6   :  { %1610 = vmatprep.subr.bf16.mxu1 %v2623_v56  ;;  %v1376_v56 = vrot.slane %v2860_v16, %v1371_v53 }
 0x2e9   :  { %1611 = vmatpush2.bf16.msra.mxu1 %v2621_v57 }
 0x2ea   :  { %1612 = vmatprep.subr.bf16.mxu1 %v2626_v11  ;;  %v2680_v11 = vld [vmem:[#allocation4 + $0x594] ss:$8 sps:$4 sm:$0xff]  }
 0x2ed   :  { %1613 = vmatpush2.bf16.msra.mxu1 %v2624_v12  ;;  %v2678_v12 = vld [vmem:[#allocation4 + $0x590] ss:$8 sps:$4 sm:$0xff]  }
 0x2ee   :  { %1614 = vmatprep.subr.bf16.mxu1 %v2629_v13  ;;  %v2683_v13 = vld [vmem:[#allocation4 + $0x584] ss:$8 sps:$4 sm:$0xff]  }
 0x2f1   :  { %1615 = vmatpush2.bf16.msra.mxu1 %v2627_v15  ;;  %v2681_v15 = vld [vmem:[#allocation4 + $0x580] ss:$8 sps:$4 sm:$0xff]  }
 0x2f2   :  { %1616 = vmatprep.subr.bf16.mxu1 %v2632_v18  ;;  %v2684_v18 = vld [vmem:[#allocation7 + $0x78] sm:$0xff]  }
 0x2f5   :  { %1617 = vmatpush2.bf16.msra.mxu1 %v2630_v19  ;;  %v2685_v19 = vld [vmem:[#allocation7 + $0x38] sm:$0xff]  }
 0x2f6   :  { %1618 = vmatprep.subr.bf16.mxu1 %v2635_v20  ;;  %v2686_v20 = vld [vmem:[#allocation7 + $0x70] sm:$0xff]  }
 0x2f9   :  { %1619 = vmatpush2.bf16.msra.mxu1 %v2633_v21  ;;  %v2687_v21 = vld [vmem:[#allocation7 + $0x30] sm:$0xff]  }
 0x2fa   :  { %2316 = vmatprep.subr.bf16.mxu1 %v2684_v18 }
 0x37c   :  { %v979_v58 = vpop.f32.mrf.mxu1 }
 0x37d   :  { %v980_v2 = vadd.f32 %v979_v58, %v780_v60 }
 0x37e   :  { %v981_v61 = vpop.f32.mrf.mxu1 }
 0x37f   :  { %v982_v63 = vadd.f32 %v981_v61, %v784_v59  ;;  %v988_v8 = vmax.f32 %v980_v2, 0.0 }
 0x380   :  { %v983_v62 = vpop.f32.mrf.mxu1 }
 0x381   :  { %v984_v1 = vadd.f32 %v983_v62, %v780_v60  ;;  %v989_v6 = vmax.f32 %v982_v63, 0.0 }
 0x382   :  { %v985_v3 = vpop.f32.mrf.mxu1 }
 0x383   :  { %v986_v4 = vadd.f32 %v985_v3, %v784_v59  ;;  %v990_v5 = vmax.f32 %v984_v1, 0.0 }
 0x385   :  { %v991_v7 = vmax.f32 %v986_v4, 0.0  ;;  %v992_v10 = vpack.c.bf16 %v990_v5, %v988_v8 }
 0x387   :  { %v993_v9 = vpack.c.bf16 %v991_v7, %v989_v6 }
 0x389   :  { %1358 = vmatprep.mubr.bf16.mxu0 %v993_v9  ;;  %v2677_v9 = vld [vmem:[#allocation4 + $0x5a4] ss:$8 sps:$4 sm:$0xff]  }
 0x38a   :  { %1359 = vmatmul.mubr.bf16.vlgmr.msra.gmra.mxu0 %v992_v10  ;;  %v2675_v10 = vld [vmem:[#allocation4 + $0x5a0] ss:$8 sps:$4 sm:$0xff]  }
 0x38b   :  { %1839 = vmatpush1.bf16.msra.mxu0 %v2636_v22  ;;  %v2688_v22 = vld [vmem:[#allocation7 + $0x68] sm:$0xff]  }
 0x38c   :  { %1840 = vmatprep.subr.bf16.mxu0 %v2641_v24  ;;  %v2690_v24 = vld [vmem:[#allocation7 + $0x60] sm:$0xff]  }
 0x38f   :  { %1841 = vmatpush1.bf16.msra.mxu0 %v2639_v25  ;;  %v2691_v25 = vld [vmem:[#allocation7 + $0x20] sm:$0xff]  }
 0x390   :  { %1842 = vmatprep.subr.bf16.mxu0 %v2644_v26  ;;  %v2692_v26 = vld [vmem:[#allocation7 + $0x58] sm:$0xff]  }
 0x393   :  { %1843 = vmatpush1.bf16.msra.mxu0 %v2642_v28  ;;  %v2693_v28 = vld [vmem:[#allocation7 + $0x18] sm:$0xff]  }
 0x394   :  { %1844 = vmatprep.subr.bf16.mxu0 %v2647_v29  ;;  %v1422_v29 = vsub.s32 5, %v2854_v14 }
 0x397   :  { %1845 = vmatpush1.bf16.msra.mxu0 %v2645_v30 }
 0x398   :  { %1846 = vmatprep.subr.bf16.mxu0 %v2650_v31  ;;  %v1427_v31 = vrot.slane %v2860_v16, %v1422_v29 }
 0x39b   :  { %1847 = vmatpush1.bf16.msra.mxu0 %v2648_v32  ;;  %v1423_v32 = vrot.slane %v2865_v17, %v1422_v29 }
 0x39c   :  { %1848 = vmatprep.subr.bf16.mxu0 %v2653_v33 }
 0x39f   :  { %1849 = vmatpush1.bf16.msra.mxu0 %v2651_v34 }
 0x3a0   :  { %1850 = vmatprep.subr.bf16.mxu0 %v2656_v0 }
 0x3a3   :  { %1851 = vmatpush1.bf16.msra.mxu0 %v2654_v35 }
 0x3a4   :  { %1852 = vmatprep.subr.bf16.mxu0 %v2659_v36 }
 0x3a7   :  { %1853 = vmatpush1.bf16.msra.mxu0 %v2657_v37 }
 0x3a8   :  { %1854 = vmatprep.subr.bf16.mxu0 %v2662_v38 }
 0x3ab   :  { %1855 = vmatpush2.bf16.msra.mxu0 %v2660_v39 }
 0x3ac   :  { %1856 = vmatprep.subr.bf16.mxu0 %v2665_v40 }
 0x3af   :  { %1857 = vmatpush2.bf16.msra.mxu0 %v2663_v41 }
 0x3b0   :  { %1858 = vmatprep.subr.bf16.mxu0 %v2668_v42 }
 0x3b3   :  { %1859 = vmatpush2.bf16.msra.mxu0 %v2666_v43 }
 0x3b4   :  { %1860 = vmatprep.subr.bf16.mxu0 %v2671_v44 }
 0x3b7   :  { %1861 = vmatpush2.bf16.msra.mxu0 %v2669_v45  ;;  %v2694_v45 = vld [vmem:[#allocation7 + $0x50] sm:$0xff]  }
 0x3b8   :  { %1862 = vmatprep.subr.bf16.mxu0 %v2674_v46  ;;  %v2695_v46 = vld [vmem:[#allocation7 + $0x10] sm:$0xff]  }
 0x3bb   :  { %1863 = vmatpush2.bf16.msra.mxu0 %v2672_v47  ;;  %v2696_v47 = vld [vmem:[#allocation7 + $0x48] sm:$0xff]  }
 0x3bc   :  { %1864 = vmatprep.subr.bf16.mxu0 %v2677_v9 }
 0x3bf   :  { %1865 = vmatpush2.bf16.msra.mxu0 %v2675_v10 }
 0x3c0   :  { %1866 = vmatprep.subr.bf16.mxu0 %v2680_v11 }
 0x3c3   :  { %1867 = vmatpush2.bf16.msra.mxu0 %v2678_v12 }
 0x3c4   :  { %1868 = vmatprep.subr.bf16.mxu0 %v2683_v13 }
 0x3c7   :  { %1869 = vmatpush2.bf16.msra.mxu0 %v2681_v15 }
 0x44a   :  { %v1360_v52 = vpop.f32.mrf.mxu0 }
 0x44b   :  { %v1361_v57 = vadd.f32 %v1360_v52, %v1157_v48  ;;  %v2697_v48 = vld [vmem:[#allocation7 + $0x8] sm:$0xff]  }
 0x44c   :  { %v1362_v54 = vpop.f32.mrf.mxu0 }
 0x44d   :  { %v1363_v55 = vadd.f32 %v1362_v54, %v1159_v49  ;;  %v1377_v1 = vadd.f32 %v1372_v27, %v1361_v57  ;;  %v2698_v49 = vld [vmem:[#allocation7 + $0x40] sm:$0xff]  }
 0x44e   :  { %v1364_v58 = vpop.f32.mrf.mxu0 }
 0x44f   :  { %v1365_v59 = vadd.f32 %v1364_v58, %v1161_v50  ;;  %v1378_v61 = vadd.f32 %v1376_v56, %v1363_v55  ;;  %v1381_v6 = vmax.f32 %v1377_v1, 0.0  ;;  %v2699_v50 = vld [vmem:[#allocation7] sm:$0xff]  }
 0x450   :  { %v1366_v60 = vpop.f32.mrf.mxu0 }
 0x451   :  { %v1379_v62 = vadd.f32 %v1372_v27, %v1365_v59  ;;  %v1367_v63 = vadd.f32 %v1366_v60, %v1163_v51  ;;  %v1382_v4 = vmax.f32 %v1378_v61, 0.0  ;;  %v1672_v51 = vsub.s32 6, %v2854_v14 }
 0x453   :  { %v1380_v2 = vadd.f32 %v1376_v56, %v1367_v63  ;;  %v1383_v3 = vmax.f32 %v1379_v62, 0.0  ;;  %v1677_v53 = vrot.slane %v2860_v16, %v1672_v51  ;;  %v1673_v54 = vrot.slane %v2865_v17, %v1672_v51  ;;  %v2299_v16 = vld [vmem:[%s2904_s6] ss:$0 sm:$0xff] }
 0x455   :  { %v1384_v5 = vmax.f32 %v1380_v2, 0.0  ;;  %v1385_v8 = vpack.c.bf16 %v1383_v3, %v1381_v6 }
 0x457   :  { %v1386_v7 = vpack.c.bf16 %v1384_v5, %v1382_v4 }
 0x459   :  { %1620 = vmatprep.mubr.bf16.mxu1 %v1386_v7 }
 0x45a   :  { %1621 = vmatmul.mubr.bf16.vlgmr.msra.gmra.mxu1 %v1385_v8 }
 0x45b   :  { %2317 = vmatpush3.bf16.msra.mxu1 %v2685_v19 }
 0x45c   :  { %2318 = vmatprep.subr.bf16.mxu1 %v2686_v20 }
 0x45f   :  { %2319 = vmatpush3.bf16.msra.mxu1 %v2687_v21 }
 0x460   :  { %2320 = vmatprep.subr.bf16.mxu1 %v2688_v22 }
 0x463   :  { %2321 = vmatpush3.bf16.msra.mxu1 %v2689_v23 }
 0x464   :  { %2322 = vmatprep.subr.bf16.mxu1 %v2690_v24 }
 0x467   :  { %2323 = vmatpush3.bf16.msra.mxu1 %v2691_v25 }
 0x468   :  { %2324 = vmatprep.subr.bf16.mxu1 %v2692_v26 }
 0x46b   :  { %2325 = vmatpush3.bf16.msra.mxu1 %v2693_v28 }
 0x46c   :  { %2326 = vmatprep.subr.bf16.mxu1 %v2694_v45 }
 0x46f   :  { %2327 = vmatpush3.bf16.msra.mxu1 %v2695_v46 }
 0x470   :  { %2328 = vmatprep.subr.bf16.mxu1 %v2696_v47 }
 0x473   :  { %2329 = vmatpush3.bf16.msra.mxu1 %v2697_v48 }
 0x474   :  { %2330 = vmatprep.subr.bf16.mxu1 %v2698_v49 }
 0x477   :  { %2331 = vmatpush3.bf16.msra.mxu1 %v2699_v50 }
 0x51a   :  { %v1622_v30 = vpop.f32.mrf.mxu1 }
 0x51b   :  { %v1623_v36 = vadd.f32 %v1622_v30, %v1423_v32 }
 0x51c   :  { %v1624_v33 = vpop.f32.mrf.mxu1 }
 0x51d   :  { %v1625_v0 = vadd.f32 %v1624_v33, %v1427_v31  ;;  %v1631_v42 = vmax.f32 %v1623_v36, 0.0 }
 0x51e   :  { %v1626_v34 = vpop.f32.mrf.mxu1 }
 0x51f   :  { %v1627_v35 = vadd.f32 %v1626_v34, %v1423_v32  ;;  %v1632_v40 = vmax.f32 %v1625_v0, 0.0 }
 0x520   :  { %v1628_v37 = vpop.f32.mrf.mxu1 }
 0x521   :  { %v1629_v38 = vadd.f32 %v1628_v37, %v1427_v31  ;;  %v1633_v39 = vmax.f32 %v1627_v35, 0.0 }
 0x523   :  { %v1634_v41 = vmax.f32 %v1629_v38, 0.0  ;;  %v1635_v44 = vpack.c.bf16 %v1633_v39, %v1631_v42 }
 0x525   :  { %v1636_v43 = vpack.c.bf16 %v1634_v41, %v1632_v40 }
 0x527   :  { %1870 = vmatprep.mubr.bf16.mxu0 %v1636_v43 }
 0x528   :  { %1871 = vmatmul.mubr.bf16.vlgmr.msra.gmra.mxu0 %v1635_v44 }
 0x5e8   :  { %v1872_v52 = vpop.f32.mrf.mxu0 }
 0x5e9   :  { %v1873_v58 = vadd.f32 %v1872_v52, %v1673_v54 }
 0x5ea   :  { %v1874_v55 = vpop.f32.mrf.mxu0 }
 0x5eb   :  { %v1875_v57 = vadd.f32 %v1874_v55, %v1677_v53  ;;  %v1881_v1 = vmax.f32 %v1873_v58, 0.0 }
 0x5ec   :  { %v1876_v56 = vpop.f32.mrf.mxu0 }
 0x5ed   :  { %v1877_v27 = vadd.f32 %v1876_v56, %v1673_v54  ;;  %v1882_v62 = vmax.f32 %v1875_v57, 0.0 }
 0x5ee   :  { %v1878_v59 = vpop.f32.mrf.mxu0 }
 0x5ef   :  { %v1879_v60 = vadd.f32 %v1878_v59, %v1677_v53  ;;  %v1883_v61 = vmax.f32 %v1877_v27, 0.0 }
 0x5f1   :  { %v1884_v63 = vmax.f32 %v1879_v60, 0.0  ;;  %v1885_v3 = vpack.c.bf16 %v1883_v61, %v1881_v1 }
 0x5f3   :  { %v1886_v2 = vpack.c.bf16 %v1884_v63, %v1882_v62 }
 0x5f5   :  { %2054 = vmatprep.mubr.bf16.mxu1 %v1886_v2 }
 0x5f6   :  { %2055 = vmatmul.mubr.bf16.vlgmr.msra.gmra.mxu1 %v1885_v3 }
 0x6b6   :  { %v2332_v14 = vpop.f32.mrf.mxu1 }
 0x6b8   :  { %v2333_v17 = vpop.f32.mrf.mxu1 }
 0x6b9   :  { %v2334_v4 = vadd.f32 %v2333_v17, %v2332_v14 }
 0x6ba   :  { %v2335_v5 = vpop.f32.mrf.mxu1 }
 0x6bb   :  { %v2057_v6 = vadd.f32 %v2334_v4, %v2299_v16 }
 0x6bc   :  { %v2336_v7 = vpop.f32.mrf.mxu1 }
 0x6bd   :  { %v2063_v8 = vmax.f32 %v2057_v6, 0.0  ;;  %v2337_v9 = vadd.f32 %v2336_v7, %v2335_v5 }
 0x6bf   :  { %2065 = vst [vmem:[%s2905_s7] sm:$0xff] %v2063_v8  ;;  %v2060_v10 = vadd.f32 %v2337_v9, %v2299_v16 }
 0x6c1   :  { %v2064_v11 = vmax.f32 %v2060_v10, 0.0 }
 0x6c3   :  { %2066 = vst [vmem:[%s2905_s7 + $0x8] sm:$0xff] %v2064_v11 }
 0x6c4   :  { %2071 = vsyncpa [#allocation3], 1 }
 0x6c5   :  { %2072 = vsyncpa [#allocation5], 1 }
 0x6c6   :  { %2073 = vsyncpa [#allocation8], 1 }

</bundles_post_ra>
